<compile_context>
chip_gen: v5e
topology: v5e:2x2
jax: 0.10.0
libtpu: 0.0.40
codegen_flags: <defaults>
</compile_context>

<pallas_src>
import jax
import jax.numpy as jnp
from jax import lax
from jax.experimental import pallas as pl
from jax.experimental.pallas import tpu as pltpu

EPS = 1e-5


def _stacked_band_weights(w3, W):
    """(3, 3, C, C) HWIO conv weight -> (W*C, 3*W*C) output-stacked band matrices.

    For each row tap dy, band[dy][(w+dx-1)*C + ci, w*C + co] = w3[dy, dx, ci, co];
    taps falling outside [0, W) are omitted, absorbing the SAME zero padding
    along W into the weight.  The three bands are concatenated along the
    output axis so the conv needs a single MXU matmul per call.
    """
    C = w3.shape[-1]
    mats = []
    for dy in range(3):
        m = jnp.zeros((W * C, W * C), w3.dtype)
        for dx in range(3):
            m = m + jnp.kron(jnp.eye(W, k=1 - dx, dtype=w3.dtype), w3[dy, dx])
        mats.append(m)
    return jnp.concatenate(mats, axis=1)          # (W*C, 3*W*C)


def _tile_lanes(v, W):
    """(1, C) per-channel vector -> (1, W*C) lane-tiled vector (w-major, c-minor)."""
    return jnp.tile(v.reshape(-1), W).reshape(1, -1)


def rrcnn_block(x_nchw, params):
    """x_nchw: (N, Cin, H, W) float32 -> (N, Cout, H, W) float32."""
    (w1, b1, w3a, b3a, ga, bta, w3b, b3b, gb, btb) = params
    del b3a, b3b  # conv bias cancels exactly under training-mode BatchNorm
    N, Cin, H, W = x_nchw.shape
    Cout = w1.shape[1]
    assert W & (W - 1) == 0, "lane roll-tree group-sum assumes power-of-two W"
    NH, WCin, WCout = N * H, W * Cin, W * Cout
    cnt_inv = 1.0 / float(N * H * W)

    # NCHW -> NHWC -> fold (W, C) into the lane axis: flat (N*H, W*Cin).
    x_f = jnp.transpose(x_nchw, (0, 2, 3, 1)).reshape(NH, WCin)

    # ---- host-side weight packing for the folded, lane-dense layout ----
    w1_bd = jnp.kron(jnp.eye(W, dtype=w1.dtype), w1)           # (W*Cin, W*Cout)
    b1_wc = _tile_lanes(b1, W)                                 # (1, W*Cout)
    wsa = _stacked_band_weights(w3a, W)                        # (WCout, 3*WCout)
    wsb = _stacked_band_weights(w3b, W)                        # (WCout, 3*WCout)
    ga_wc, bta_wc = _tile_lanes(ga, W), _tile_lanes(bta, W)
    gb_wc, btb_wc = _tile_lanes(gb, W), _tile_lanes(btb, W)

    # Hoisted (host-built) boundary masks: zero out rows that wrap across the
    # top/bottom image edge (SAME padding in H) or across batch images after
    # the sublane rolls.  Full lane width so no per-use broadcast is emitted.
    hh = (jnp.arange(NH, dtype=jnp.int32) % H).astype(jnp.float32)[:, None]
    ones_row = jnp.ones((1, WCout), jnp.float32)
    mask_top = jnp.where(hh != 0.0, 1.0, 0.0) * ones_row        # (NH, WCout)
    mask_bot = jnp.where(hh != float(H - 1), 1.0, 0.0) * ones_row

    def kernel(x_ref, w1_ref, b1_ref, wsa_ref, ga_ref, bta_ref,
               wsb_ref, gb_ref, btb_ref, mt_ref, mb_ref, out_ref):
        # Loop-invariant values: loaded once, closed over by the 6 stages.
        m_top = mt_ref[...]
        m_bot = mb_ref[...]
        ga_v, bta_v = ga_ref[...], bta_ref[...]
        gb_v, btb_v = gb_ref[...], btb_ref[...]

        def lane_group_sum(v):
            # Per-channel sum over the W groups folded into the lane axis,
            # replicated back to every lane: log2(W) XLU roll+add steps
            # (replaces the M=2 group-sum matmul of v2).
            r = v
            sh = Cout
            while sh < WCout:
                r = r + pltpu.roll(r, sh, axis=1)
                sh *= 2
            return r

        def conv_bn_relu(xin, ws_ref, gamma, beta):
            # xin: (NH, WCout).  3x3 SAME conv == ONE stacked banded matmul
            # (all three dy row taps at once, K = WCout, Nout = 3*WCout).
            y = jnp.dot(xin, ws_ref[...], preferred_element_type=jnp.float32)
            # Assemble z from the three 128-lane slabs: row h gets slab0 from
            # row h-1 and slab2 from row h+1 (sublane rolls + boundary masks).
            z = (y[:, WCout:2 * WCout]
                 + m_top * pltpu.roll(y[:, :WCout], 1, axis=0)
                 + m_bot * pltpu.roll(y[:, 2 * WCout:], NH - 1, axis=0))
            # Fused BatchNorm (training-mode batch stats, biased var) + ReLU.
            # TODO(synk): single-pass var (E[z^2]-mean^2); re-check with
            # trained-scale weights where cancellation could matter.
            mean = lane_group_sum(jnp.sum(z, axis=0, keepdims=True)) * cnt_inv
            ex2 = lane_group_sum(jnp.sum(z * z, axis=0, keepdims=True)) * cnt_inv
            var = ex2 - mean * mean
            scale = gamma * lax.rsqrt(var + EPS)
            shift = beta - mean * scale       # conv bias folded away (cancels)
            return jnp.maximum(z * scale + shift, 0.0)

        def recurrent_block(xin, ws_ref, gamma, beta):        # t = 2
            x1 = conv_bn_relu(xin, ws_ref, gamma, beta)
            x1 = conv_bn_relu(xin + x1, ws_ref, gamma, beta)
            x1 = conv_bn_relu(xin + x1, ws_ref, gamma, beta)
            return x1

        # Conv 1x1 (+ bias) as a block-diagonal matmul in the folded layout.
        x0 = (jnp.dot(x_ref[...], w1_ref[...],
                      preferred_element_type=jnp.float32) + b1_ref[...])
        r = recurrent_block(x0, wsa_ref, ga_v, bta_v)
        r = recurrent_block(r, wsb_ref, gb_v, btb_v)
        out_ref[...] = x0 + r     # single lane-dense output store: x0 + RCNN(x0)

    vmem = pl.BlockSpec(memory_space=pltpu.MemorySpace.VMEM)
    out = pl.pallas_call(
        kernel,
        out_shape=jax.ShapeDtypeStruct((NH, WCout), jnp.float32),
        in_specs=[vmem] * 11,
        out_specs=vmem,
        compiler_params=pltpu.CompilerParams(vmem_limit_bytes=32 * 1024 * 1024),
    )(x_f, w1_bd, b1_wc, wsa, ga_wc, bta_wc, wsb, gb_wc, btb_wc,
      mask_top, mask_bot)
    # NHWC -> NCHW (kept for the PyTorch-facing interface; at production sizes
    # keep the folded layout across chained blocks instead).
    return jnp.transpose(out.reshape(N, H, W, Cout), (0, 3, 1, 2))


def init_params(key, ch_in, ch_out):
    ks = jax.random.split(key, 10)
    # Conv_1x1: PyTorch weight (Cout, Cin, 1, 1) -> stored as (Cin, Cout)
    w1 = 0.2 * jax.random.normal(ks[0], (ch_in, ch_out), jnp.float32)
    b1 = 0.1 * jax.random.normal(ks[1], (1, ch_out), jnp.float32)
    # Recurrent block A: conv3x3 weight (Cout, Cout, 3, 3) -> (3, 3, Cin, Cout)
    w3a = 0.1 * jax.random.normal(ks[2], (3, 3, ch_out, ch_out), jnp.float32)
    b3a = 0.1 * jax.random.normal(ks[3], (1, ch_out), jnp.float32)
    ga = 1.0 + 0.1 * jax.random.normal(ks[4], (1, ch_out), jnp.float32)
    bta = 0.1 * jax.random.normal(ks[5], (1, ch_out), jnp.float32)
    # Recurrent block B
    w3b = 0.1 * jax.random.normal(ks[6], (3, 3, ch_out, ch_out), jnp.float32)
    b3b = 0.1 * jax.random.normal(ks[7], (1, ch_out), jnp.float32)
    gb = 1.0 + 0.1 * jax.random.normal(ks[8], (1, ch_out), jnp.float32)
    btb = 0.1 * jax.random.normal(ks[9], (1, ch_out), jnp.float32)
    return (w1, b1, w3a, b3a, ga, bta, w3b, b3b, gb, btb)


def ref_forward(x_nchw, params):
    """Pure-JAX reference of the PyTorch forward (NHWC internally, f32)."""
    (w1, b1, w3a, b3a, ga, bta, w3b, b3b, gb, btb) = params
    x = jnp.transpose(x_nchw, (0, 2, 3, 1))
    x0 = jnp.einsum('nhwc,cd->nhwd', x, w1) + b1[0]

    def conv_bn_relu(inp, w3, b3, gamma, beta):
        z = lax.conv_general_dilated(
            inp, w3, window_strides=(1, 1), padding='SAME',
            dimension_numbers=('NHWC', 'HWIO', 'NHWC')) + b3[0]
        mean = jnp.mean(z, axis=(0, 1, 2))
        var = jnp.mean((z - mean) ** 2, axis=(0, 1, 2))
        zn = (z - mean) * lax.rsqrt(var + EPS) * gamma[0] + beta[0]
        return jnp.maximum(zn, 0.0)

    def rec(xin, w3, b3, g, bt):
        x1 = conv_bn_relu(xin, w3, b3, g, bt)
        x1 = conv_bn_relu(xin + x1, w3, b3, g, bt)
        x1 = conv_bn_relu(xin + x1, w3, b3, g, bt)
        return x1

    r = rec(x0, w3a, b3a, ga, bta)
    r = rec(r, w3b, b3b, gb, btb)
    return jnp.transpose(x0 + r, (0, 3, 1, 2))


if __name__ == "__main__":
    key = jax.random.PRNGKey(0)
    kx, kp = jax.random.split(key)

    N, CH_IN, CH_OUT, H, W = 2, 4, 8, 16, 16          # W*CH_OUT == 128 lanes
    x = jax.random.normal(kx, (N, CH_IN, H, W), jnp.float32)   # NCHW like PyTorch
    params = init_params(kp, CH_IN, CH_OUT)

    out = jax.block_until_ready(rrcnn_block(x, params))
    ref = jax.block_until_ready(ref_forward(x, params))

    assert out.shape == (N, CH_OUT, H, W), out.shape
    assert jnp.allclose(out, ref, atol=1e-3, rtol=1e-3), float(
        jnp.max(jnp.abs(out - ref)))
    print("KERNEL_OK")
</pallas_src>

<mosaic_0001>
module attributes {stable_mosaic.version = 11 : i64} {
  func.func @kernel(%arg0: memref<32x64xf32, #tpu.memory_space<vmem>>, %arg1: memref<64x128xf32, #tpu.memory_space<vmem>>, %arg2: memref<1x128xf32, #tpu.memory_space<vmem>>, %arg3: memref<128x384xf32, #tpu.memory_space<vmem>>, %arg4: memref<1x128xf32, #tpu.memory_space<vmem>>, %arg5: memref<1x128xf32, #tpu.memory_space<vmem>>, %arg6: memref<128x384xf32, #tpu.memory_space<vmem>>, %arg7: memref<1x128xf32, #tpu.memory_space<vmem>>, %arg8: memref<1x128xf32, #tpu.memory_space<vmem>>, %arg9: memref<32x128xf32, #tpu.memory_space<vmem>>, %arg10: memref<32x128xf32, #tpu.memory_space<vmem>>, %arg11: memref<32x128xf32, #tpu.memory_space<vmem>>) attributes {dimension_semantics = [], scalar_prefetch = 0 : i64, scratch_operands = 0 : i64, tpu.core_type = #tpu.core_type<tc>} {
    %c0 = arith.constant 0 : index
    %c0_0 = arith.constant 0 : index
    %0 = vector.load %arg9[%c0, %c0_0] : memref<32x128xf32, #tpu.memory_space<vmem>>, vector<32x128xf32>
    %c0_1 = arith.constant 0 : index
    %c0_2 = arith.constant 0 : index
    %1 = vector.load %arg10[%c0_1, %c0_2] : memref<32x128xf32, #tpu.memory_space<vmem>>, vector<32x128xf32>
    %c0_3 = arith.constant 0 : index
    %c0_4 = arith.constant 0 : index
    %2 = vector.load %arg4[%c0_3, %c0_4] : memref<1x128xf32, #tpu.memory_space<vmem>>, vector<1x128xf32>
    %c0_5 = arith.constant 0 : index
    %c0_6 = arith.constant 0 : index
    %3 = vector.load %arg5[%c0_5, %c0_6] : memref<1x128xf32, #tpu.memory_space<vmem>>, vector<1x128xf32>
    %c0_7 = arith.constant 0 : index
    %c0_8 = arith.constant 0 : index
    %4 = vector.load %arg7[%c0_7, %c0_8] : memref<1x128xf32, #tpu.memory_space<vmem>>, vector<1x128xf32>
    %c0_9 = arith.constant 0 : index
    %c0_10 = arith.constant 0 : index
    %5 = vector.load %arg8[%c0_9, %c0_10] : memref<1x128xf32, #tpu.memory_space<vmem>>, vector<1x128xf32>
    %c0_11 = arith.constant 0 : index
    %c0_12 = arith.constant 0 : index
    %6 = vector.load %arg0[%c0_11, %c0_12] : memref<32x64xf32, #tpu.memory_space<vmem>>, vector<32x64xf32>
    %c0_13 = arith.constant 0 : index
    %c0_14 = arith.constant 0 : index
    %7 = vector.load %arg1[%c0_13, %c0_14] : memref<64x128xf32, #tpu.memory_space<vmem>>, vector<64x128xf32>
    %cst = arith.constant dense<0.000000e+00> : vector<32x128xf32>
    %8 = tpu.matmul %6, %7, %cst {dimension_numbers = #tpu.dot_dimension_numbers<[1], [0], [0], [1], [0, 0, 1, 1], [], []>} : vector<32x64xf32>, vector<64x128xf32>, vector<32x128xf32> -> vector<32x128xf32>
    %c0_15 = arith.constant 0 : index
    %c0_16 = arith.constant 0 : index
    %9 = vector.load %arg2[%c0_15, %c0_16] : memref<1x128xf32, #tpu.memory_space<vmem>>, vector<1x128xf32>
    %10 = vector.broadcast %9 : vector<1x128xf32> to vector<32x128xf32>
    %11 = arith.addf %8, %10 : vector<32x128xf32>
    %c0_17 = arith.constant 0 : index
    %c0_18 = arith.constant 0 : index
    %12 = vector.load %arg3[%c0_17, %c0_18] : memref<128x384xf32, #tpu.memory_space<vmem>>, vector<128x384xf32>
    %cst_19 = arith.constant dense<0.000000e+00> : vector<32x384xf32>
    %13 = tpu.matmul %11, %12, %cst_19 {dimension_numbers = #tpu.dot_dimension_numbers<[1], [0], [0], [1], [0, 0, 1, 1], [], []>} : vector<32x128xf32>, vector<128x384xf32>, vector<32x384xf32> -> vector<32x384xf32>
    %14 = vector.extract_strided_slice %13 {offsets = [0, 128], sizes = [32, 128], strides = [1, 1]} : vector<32x384xf32> to vector<32x128xf32>
    %15 = vector.extract_strided_slice %13 {offsets = [0, 0], sizes = [32, 128], strides = [1, 1]} : vector<32x384xf32> to vector<32x128xf32>
    %c1_i32 = arith.constant 1 : i32
    %16 = tpu.dynamic_rotate %15 by %c1_i32 dim 0 : vector<32x128xf32>, i32 -> vector<32x128xf32>
    %17 = arith.mulf %0, %16 : vector<32x128xf32>
    %18 = arith.addf %14, %17 : vector<32x128xf32>
    %19 = vector.extract_strided_slice %13 {offsets = [0, 256], sizes = [32, 128], strides = [1, 1]} : vector<32x384xf32> to vector<32x128xf32>
    %c31_i32 = arith.constant 31 : i32
    %20 = tpu.dynamic_rotate %19 by %c31_i32 dim 0 : vector<32x128xf32>, i32 -> vector<32x128xf32>
    %21 = arith.mulf %1, %20 : vector<32x128xf32>
    %22 = arith.addf %18, %21 : vector<32x128xf32>
    %cst_20 = arith.constant dense<0.000000e+00> : vector<128xf32>
    %23 = vector.multi_reduction <add>, %22, %cst_20 [0] : vector<32x128xf32> to vector<128xf32>
    %24 = vector.shape_cast %23 : vector<128xf32> to vector<1x128xf32>
    %c8_i32 = arith.constant 8 : i32
    %25 = tpu.dynamic_rotate %24 by %c8_i32 dim 1 : vector<1x128xf32>, i32 -> vector<1x128xf32>
    %26 = arith.addf %24, %25 : vector<1x128xf32>
    %c16_i32 = arith.constant 16 : i32
    %27 = tpu.dynamic_rotate %26 by %c16_i32 dim 1 : vector<1x128xf32>, i32 -> vector<1x128xf32>
    %28 = arith.addf %26, %27 : vector<1x128xf32>
    %c32_i32 = arith.constant 32 : i32
    %29 = tpu.dynamic_rotate %28 by %c32_i32 dim 1 : vector<1x128xf32>, i32 -> vector<1x128xf32>
    %30 = arith.addf %28, %29 : vector<1x128xf32>
    %c64_i32 = arith.constant 64 : i32
    %31 = tpu.dynamic_rotate %30 by %c64_i32 dim 1 : vector<1x128xf32>, i32 -> vector<1x128xf32>
    %32 = arith.addf %30, %31 : vector<1x128xf32>
    %cst_21 = arith.constant 0.001953125 : f32
    %33 = vector.broadcast %cst_21 : f32 to vector<1x128xf32>
    %34 = arith.mulf %32, %33 : vector<1x128xf32>
    %35 = arith.mulf %22, %22 : vector<32x128xf32>
    %cst_22 = arith.constant dense<0.000000e+00> : vector<128xf32>
    %36 = vector.multi_reduction <add>, %35, %cst_22 [0] : vector<32x128xf32> to vector<128xf32>
    %37 = vector.shape_cast %36 : vector<128xf32> to vector<1x128xf32>
    %c8_i32_23 = arith.constant 8 : i32
    %38 = tpu.dynamic_rotate %37 by %c8_i32_23 dim 1 : vector<1x128xf32>, i32 -> vector<1x128xf32>
    %39 = arith.addf %37, %38 : vector<1x128xf32>
    %c16_i32_24 = arith.constant 16 : i32
    %40 = tpu.dynamic_rotate %39 by %c16_i32_24 dim 1 : vector<1x128xf32>, i32 -> vector<1x128xf32>
    %41 = arith.addf %39, %40 : vector<1x128xf32>
    %c32_i32_25 = arith.constant 32 : i32
    %42 = tpu.dynamic_rotate %41 by %c32_i32_25 dim 1 : vector<1x128xf32>, i32 -> vector<1x128xf32>
    %43 = arith.addf %41, %42 : vector<1x128xf32>
    %c64_i32_26 = arith.constant 64 : i32
    %44 = tpu.dynamic_rotate %43 by %c64_i32_26 dim 1 : vector<1x128xf32>, i32 -> vector<1x128xf32>
    %45 = arith.addf %43, %44 : vector<1x128xf32>
    %cst_27 = arith.constant 0.001953125 : f32
    %46 = vector.broadcast %cst_27 : f32 to vector<1x128xf32>
    %47 = arith.mulf %45, %46 : vector<1x128xf32>
    %48 = arith.mulf %34, %34 : vector<1x128xf32>
    %49 = arith.subf %47, %48 : vector<1x128xf32>
    %cst_28 = arith.constant 9.99999974E-6 : f32
    %50 = vector.broadcast %cst_28 : f32 to vector<1x128xf32>
    %51 = arith.addf %49, %50 : vector<1x128xf32>
    %52 = math.rsqrt %51 : vector<1x128xf32>
    %53 = arith.mulf %2, %52 : vector<1x128xf32>
    %54 = arith.mulf %34, %53 : vector<1x128xf32>
    %55 = arith.subf %3, %54 : vector<1x128xf32>
    %56 = vector.broadcast %53 : vector<1x128xf32> to vector<32x128xf32>
    %57 = arith.mulf %22, %56 : vector<32x128xf32>
    %58 = vector.broadcast %55 : vector<1x128xf32> to vector<32x128xf32>
    %59 = arith.addf %57, %58 : vector<32x128xf32>
    %cst_29 = arith.constant 0.000000e+00 : f32
    %60 = vector.broadcast %cst_29 : f32 to vector<32x128xf32>
    %61 = arith.maximumf %59, %60 : vector<32x128xf32>
    %62 = arith.addf %11, %61 : vector<32x128xf32>
    %c0_30 = arith.constant 0 : index
    %c0_31 = arith.constant 0 : index
    %63 = vector.load %arg3[%c0_30, %c0_31] : memref<128x384xf32, #tpu.memory_space<vmem>>, vector<128x384xf32>
    %cst_32 = arith.constant dense<0.000000e+00> : vector<32x384xf32>
    %64 = tpu.matmul %62, %63, %cst_32 {dimension_numbers = #tpu.dot_dimension_numbers<[1], [0], [0], [1], [0, 0, 1, 1], [], []>} : vector<32x128xf32>, vector<128x384xf32>, vector<32x384xf32> -> vector<32x384xf32>
    %65 = vector.extract_strided_slice %64 {offsets = [0, 128], sizes = [32, 128], strides = [1, 1]} : vector<32x384xf32> to vector<32x128xf32>
    %66 = vector.extract_strided_slice %64 {offsets = [0, 0], sizes = [32, 128], strides = [1, 1]} : vector<32x384xf32> to vector<32x128xf32>
    %c1_i32_33 = arith.constant 1 : i32
    %67 = tpu.dynamic_rotate %66 by %c1_i32_33 dim 0 : vector<32x128xf32>, i32 -> vector<32x128xf32>
    %68 = arith.mulf %0, %67 : vector<32x128xf32>
    %69 = arith.addf %65, %68 : vector<32x128xf32>
    %70 = vector.extract_strided_slice %64 {offsets = [0, 256], sizes = [32, 128], strides = [1, 1]} : vector<32x384xf32> to vector<32x128xf32>
    %c31_i32_34 = arith.constant 31 : i32
    %71 = tpu.dynamic_rotate %70 by %c31_i32_34 dim 0 : vector<32x128xf32>, i32 -> vector<32x128xf32>
    %72 = arith.mulf %1, %71 : vector<32x128xf32>
    %73 = arith.addf %69, %72 : vector<32x128xf32>
    %cst_35 = arith.constant dense<0.000000e+00> : vector<128xf32>
    %74 = vector.multi_reduction <add>, %73, %cst_35 [0] : vector<32x128xf32> to vector<128xf32>
    %75 = vector.shape_cast %74 : vector<128xf32> to vector<1x128xf32>
    %c8_i32_36 = arith.constant 8 : i32
    %76 = tpu.dynamic_rotate %75 by %c8_i32_36 dim 1 : vector<1x128xf32>, i32 -> vector<1x128xf32>
    %77 = arith.addf %75, %76 : vector<1x128xf32>
    %c16_i32_37 = arith.constant 16 : i32
    %78 = tpu.dynamic_rotate %77 by %c16_i32_37 dim 1 : vector<1x128xf32>, i32 -> vector<1x128xf32>
    %79 = arith.addf %77, %78 : vector<1x128xf32>
    %c32_i32_38 = arith.constant 32 : i32
    %80 = tpu.dynamic_rotate %79 by %c32_i32_38 dim 1 : vector<1x128xf32>, i32 -> vector<1x128xf32>
    %81 = arith.addf %79, %80 : vector<1x128xf32>
    %c64_i32_39 = arith.constant 64 : i32
    %82 = tpu.dynamic_rotate %81 by %c64_i32_39 dim 1 : vector<1x128xf32>, i32 -> vector<1x128xf32>
    %83 = arith.addf %81, %82 : vector<1x128xf32>
    %cst_40 = arith.constant 0.001953125 : f32
    %84 = vector.broadcast %cst_40 : f32 to vector<1x128xf32>
    %85 = arith.mulf %83, %84 : vector<1x128xf32>
    %86 = arith.mulf %73, %73 : vector<32x128xf32>
    %cst_41 = arith.constant dense<0.000000e+00> : vector<128xf32>
    %87 = vector.multi_reduction <add>, %86, %cst_41 [0] : vector<32x128xf32> to vector<128xf32>
    %88 = vector.shape_cast %87 : vector<128xf32> to vector<1x128xf32>
    %c8_i32_42 = arith.constant 8 : i32
    %89 = tpu.dynamic_rotate %88 by %c8_i32_42 dim 1 : vector<1x128xf32>, i32 -> vector<1x128xf32>
    %90 = arith.addf %88, %89 : vector<1x128xf32>
    %c16_i32_43 = arith.constant 16 : i32
    %91 = tpu.dynamic_rotate %90 by %c16_i32_43 dim 1 : vector<1x128xf32>, i32 -> vector<1x128xf32>
    %92 = arith.addf %90, %91 : vector<1x128xf32>
    %c32_i32_44 = arith.constant 32 : i32
    %93 = tpu.dynamic_rotate %92 by %c32_i32_44 dim 1 : vector<1x128xf32>, i32 -> vector<1x128xf32>
    %94 = arith.addf %92, %93 : vector<1x128xf32>
    %c64_i32_45 = arith.constant 64 : i32
    %95 = tpu.dynamic_rotate %94 by %c64_i32_45 dim 1 : vector<1x128xf32>, i32 -> vector<1x128xf32>
    %96 = arith.addf %94, %95 : vector<1x128xf32>
    %cst_46 = arith.constant 0.001953125 : f32
    %97 = vector.broadcast %cst_46 : f32 to vector<1x128xf32>
    %98 = arith.mulf %96, %97 : vector<1x128xf32>
    %99 = arith.mulf %85, %85 : vector<1x128xf32>
    %100 = arith.subf %98, %99 : vector<1x128xf32>
    %cst_47 = arith.constant 9.99999974E-6 : f32
    %101 = vector.broadcast %cst_47 : f32 to vector<1x128xf32>
    %102 = arith.addf %100, %101 : vector<1x128xf32>
    %103 = math.rsqrt %102 : vector<1x128xf32>
    %104 = arith.mulf %2, %103 : vector<1x128xf32>
    %105 = arith.mulf %85, %104 : vector<1x128xf32>
    %106 = arith.subf %3, %105 : vector<1x128xf32>
    %107 = vector.broadcast %104 : vector<1x128xf32> to vector<32x128xf32>
    %108 = arith.mulf %73, %107 : vector<32x128xf32>
    %109 = vector.broadcast %106 : vector<1x128xf32> to vector<32x128xf32>
    %110 = arith.addf %108, %109 : vector<32x128xf32>
    %cst_48 = arith.constant 0.000000e+00 : f32
    %111 = vector.broadcast %cst_48 : f32 to vector<32x128xf32>
    %112 = arith.maximumf %110, %111 : vector<32x128xf32>
    %113 = arith.addf %11, %112 : vector<32x128xf32>
    %c0_49 = arith.constant 0 : index
    %c0_50 = arith.constant 0 : index
    %114 = vector.load %arg3[%c0_49, %c0_50] : memref<128x384xf32, #tpu.memory_space<vmem>>, vector<128x384xf32>
    %cst_51 = arith.constant dense<0.000000e+00> : vector<32x384xf32>
    %115 = tpu.matmul %113, %114, %cst_51 {dimension_numbers = #tpu.dot_dimension_numbers<[1], [0], [0], [1], [0, 0, 1, 1], [], []>} : vector<32x128xf32>, vector<128x384xf32>, vector<32x384xf32> -> vector<32x384xf32>
    %116 = vector.extract_strided_slice %115 {offsets = [0, 128], sizes = [32, 128], strides = [1, 1]} : vector<32x384xf32> to vector<32x128xf32>
    %117 = vector.extract_strided_slice %115 {offsets = [0, 0], sizes = [32, 128], strides = [1, 1]} : vector<32x384xf32> to vector<32x128xf32>
    %c1_i32_52 = arith.constant 1 : i32
    %118 = tpu.dynamic_rotate %117 by %c1_i32_52 dim 0 : vector<32x128xf32>, i32 -> vector<32x128xf32>
    %119 = arith.mulf %0, %118 : vector<32x128xf32>
    %120 = arith.addf %116, %119 : vector<32x128xf32>
    %121 = vector.extract_strided_slice %115 {offsets = [0, 256], sizes = [32, 128], strides = [1, 1]} : vector<32x384xf32> to vector<32x128xf32>
    %c31_i32_53 = arith.constant 31 : i32
    %122 = tpu.dynamic_rotate %121 by %c31_i32_53 dim 0 : vector<32x128xf32>, i32 -> vector<32x128xf32>
    %123 = arith.mulf %1, %122 : vector<32x128xf32>
    %124 = arith.addf %120, %123 : vector<32x128xf32>
    %cst_54 = arith.constant dense<0.000000e+00> : vector<128xf32>
    %125 = vector.multi_reduction <add>, %124, %cst_54 [0] : vector<32x128xf32> to vector<128xf32>
    %126 = vector.shape_cast %125 : vector<128xf32> to vector<1x128xf32>
    %c8_i32_55 = arith.constant 8 : i32
    %127 = tpu.dynamic_rotate %126 by %c8_i32_55 dim 1 : vector<1x128xf32>, i32 -> vector<1x128xf32>
    %128 = arith.addf %126, %127 : vector<1x128xf32>
    %c16_i32_56 = arith.constant 16 : i32
    %129 = tpu.dynamic_rotate %128 by %c16_i32_56 dim 1 : vector<1x128xf32>, i32 -> vector<1x128xf32>
    %130 = arith.addf %128, %129 : vector<1x128xf32>
    %c32_i32_57 = arith.constant 32 : i32
    %131 = tpu.dynamic_rotate %130 by %c32_i32_57 dim 1 : vector<1x128xf32>, i32 -> vector<1x128xf32>
    %132 = arith.addf %130, %131 : vector<1x128xf32>
    %c64_i32_58 = arith.constant 64 : i32
    %133 = tpu.dynamic_rotate %132 by %c64_i32_58 dim 1 : vector<1x128xf32>, i32 -> vector<1x128xf32>
    %134 = arith.addf %132, %133 : vector<1x128xf32>
    %cst_59 = arith.constant 0.001953125 : f32
    %135 = vector.broadcast %cst_59 : f32 to vector<1x128xf32>
    %136 = arith.mulf %134, %135 : vector<1x128xf32>
    %137 = arith.mulf %124, %124 : vector<32x128xf32>
    %cst_60 = arith.constant dense<0.000000e+00> : vector<128xf32>
    %138 = vector.multi_reduction <add>, %137, %cst_60 [0] : vector<32x128xf32> to vector<128xf32>
    %139 = vector.shape_cast %138 : vector<128xf32> to vector<1x128xf32>
    %c8_i32_61 = arith.constant 8 : i32
    %140 = tpu.dynamic_rotate %139 by %c8_i32_61 dim 1 : vector<1x128xf32>, i32 -> vector<1x128xf32>
    %141 = arith.addf %139, %140 : vector<1x128xf32>
    %c16_i32_62 = arith.constant 16 : i32
    %142 = tpu.dynamic_rotate %141 by %c16_i32_62 dim 1 : vector<1x128xf32>, i32 -> vector<1x128xf32>
    %143 = arith.addf %141, %142 : vector<1x128xf32>
    %c32_i32_63 = arith.constant 32 : i32
    %144 = tpu.dynamic_rotate %143 by %c32_i32_63 dim 1 : vector<1x128xf32>, i32 -> vector<1x128xf32>
    %145 = arith.addf %143, %144 : vector<1x128xf32>
    %c64_i32_64 = arith.constant 64 : i32
    %146 = tpu.dynamic_rotate %145 by %c64_i32_64 dim 1 : vector<1x128xf32>, i32 -> vector<1x128xf32>
    %147 = arith.addf %145, %146 : vector<1x128xf32>
    %cst_65 = arith.constant 0.001953125 : f32
    %148 = vector.broadcast %cst_65 : f32 to vector<1x128xf32>
    %149 = arith.mulf %147, %148 : vector<1x128xf32>
    %150 = arith.mulf %136, %136 : vector<1x128xf32>
    %151 = arith.subf %149, %150 : vector<1x128xf32>
    %cst_66 = arith.constant 9.99999974E-6 : f32
    %152 = vector.broadcast %cst_66 : f32 to vector<1x128xf32>
    %153 = arith.addf %151, %152 : vector<1x128xf32>
    %154 = math.rsqrt %153 : vector<1x128xf32>
    %155 = arith.mulf %2, %154 : vector<1x128xf32>
    %156 = arith.mulf %136, %155 : vector<1x128xf32>
    %157 = arith.subf %3, %156 : vector<1x128xf32>
    %158 = vector.broadcast %155 : vector<1x128xf32> to vector<32x128xf32>
    %159 = arith.mulf %124, %158 : vector<32x128xf32>
    %160 = vector.broadcast %157 : vector<1x128xf32> to vector<32x128xf32>
    %161 = arith.addf %159, %160 : vector<32x128xf32>
    %cst_67 = arith.constant 0.000000e+00 : f32
    %162 = vector.broadcast %cst_67 : f32 to vector<32x128xf32>
    %163 = arith.maximumf %161, %162 : vector<32x128xf32>
    %c0_68 = arith.constant 0 : index
    %c0_69 = arith.constant 0 : index
    %164 = vector.load %arg6[%c0_68, %c0_69] : memref<128x384xf32, #tpu.memory_space<vmem>>, vector<128x384xf32>
    %cst_70 = arith.constant dense<0.000000e+00> : vector<32x384xf32>
    %165 = tpu.matmul %163, %164, %cst_70 {dimension_numbers = #tpu.dot_dimension_numbers<[1], [0], [0], [1], [0, 0, 1, 1], [], []>} : vector<32x128xf32>, vector<128x384xf32>, vector<32x384xf32> -> vector<32x384xf32>
    %166 = vector.extract_strided_slice %165 {offsets = [0, 128], sizes = [32, 128], strides = [1, 1]} : vector<32x384xf32> to vector<32x128xf32>
    %167 = vector.extract_strided_slice %165 {offsets = [0, 0], sizes = [32, 128], strides = [1, 1]} : vector<32x384xf32> to vector<32x128xf32>
    %c1_i32_71 = arith.constant 1 : i32
    %168 = tpu.dynamic_rotate %167 by %c1_i32_71 dim 0 : vector<32x128xf32>, i32 -> vector<32x128xf32>
    %169 = arith.mulf %0, %168 : vector<32x128xf32>
    %170 = arith.addf %166, %169 : vector<32x128xf32>
    %171 = vector.extract_strided_slice %165 {offsets = [0, 256], sizes = [32, 128], strides = [1, 1]} : vector<32x384xf32> to vector<32x128xf32>
    %c31_i32_72 = arith.constant 31 : i32
    %172 = tpu.dynamic_rotate %171 by %c31_i32_72 dim 0 : vector<32x128xf32>, i32 -> vector<32x128xf32>
    %173 = arith.mulf %1, %172 : vector<32x128xf32>
    %174 = arith.addf %170, %173 : vector<32x128xf32>
    %cst_73 = arith.constant dense<0.000000e+00> : vector<128xf32>
    %175 = vector.multi_reduction <add>, %174, %cst_73 [0] : vector<32x128xf32> to vector<128xf32>
    %176 = vector.shape_cast %175 : vector<128xf32> to vector<1x128xf32>
    %c8_i32_74 = arith.constant 8 : i32
    %177 = tpu.dynamic_rotate %176 by %c8_i32_74 dim 1 : vector<1x128xf32>, i32 -> vector<1x128xf32>
    %178 = arith.addf %176, %177 : vector<1x128xf32>
    %c16_i32_75 = arith.constant 16 : i32
    %179 = tpu.dynamic_rotate %178 by %c16_i32_75 dim 1 : vector<1x128xf32>, i32 -> vector<1x128xf32>
    %180 = arith.addf %178, %179 : vector<1x128xf32>
    %c32_i32_76 = arith.constant 32 : i32
    %181 = tpu.dynamic_rotate %180 by %c32_i32_76 dim 1 : vector<1x128xf32>, i32 -> vector<1x128xf32>
    %182 = arith.addf %180, %181 : vector<1x128xf32>
    %c64_i32_77 = arith.constant 64 : i32
    %183 = tpu.dynamic_rotate %182 by %c64_i32_77 dim 1 : vector<1x128xf32>, i32 -> vector<1x128xf32>
    %184 = arith.addf %182, %183 : vector<1x128xf32>
    %cst_78 = arith.constant 0.001953125 : f32
    %185 = vector.broadcast %cst_78 : f32 to vector<1x128xf32>
    %186 = arith.mulf %184, %185 : vector<1x128xf32>
    %187 = arith.mulf %174, %174 : vector<32x128xf32>
    %cst_79 = arith.constant dense<0.000000e+00> : vector<128xf32>
    %188 = vector.multi_reduction <add>, %187, %cst_79 [0] : vector<32x128xf32> to vector<128xf32>
    %189 = vector.shape_cast %188 : vector<128xf32> to vector<1x128xf32>
    %c8_i32_80 = arith.constant 8 : i32
    %190 = tpu.dynamic_rotate %189 by %c8_i32_80 dim 1 : vector<1x128xf32>, i32 -> vector<1x128xf32>
    %191 = arith.addf %189, %190 : vector<1x128xf32>
    %c16_i32_81 = arith.constant 16 : i32
    %192 = tpu.dynamic_rotate %191 by %c16_i32_81 dim 1 : vector<1x128xf32>, i32 -> vector<1x128xf32>
    %193 = arith.addf %191, %192 : vector<1x128xf32>
    %c32_i32_82 = arith.constant 32 : i32
    %194 = tpu.dynamic_rotate %193 by %c32_i32_82 dim 1 : vector<1x128xf32>, i32 -> vector<1x128xf32>
    %195 = arith.addf %193, %194 : vector<1x128xf32>
    %c64_i32_83 = arith.constant 64 : i32
    %196 = tpu.dynamic_rotate %195 by %c64_i32_83 dim 1 : vector<1x128xf32>, i32 -> vector<1x128xf32>
    %197 = arith.addf %195, %196 : vector<1x128xf32>
    %cst_84 = arith.constant 0.001953125 : f32
    %198 = vector.broadcast %cst_84 : f32 to vector<1x128xf32>
    %199 = arith.mulf %197, %198 : vector<1x128xf32>
    %200 = arith.mulf %186, %186 : vector<1x128xf32>
    %201 = arith.subf %199, %200 : vector<1x128xf32>
    %cst_85 = arith.constant 9.99999974E-6 : f32
    %202 = vector.broadcast %cst_85 : f32 to vector<1x128xf32>
    %203 = arith.addf %201, %202 : vector<1x128xf32>
    %204 = math.rsqrt %203 : vector<1x128xf32>
    %205 = arith.mulf %4, %204 : vector<1x128xf32>
    %206 = arith.mulf %186, %205 : vector<1x128xf32>
    %207 = arith.subf %5, %206 : vector<1x128xf32>
    %208 = vector.broadcast %205 : vector<1x128xf32> to vector<32x128xf32>
    %209 = arith.mulf %174, %208 : vector<32x128xf32>
    %210 = vector.broadcast %207 : vector<1x128xf32> to vector<32x128xf32>
    %211 = arith.addf %209, %210 : vector<32x128xf32>
    %cst_86 = arith.constant 0.000000e+00 : f32
    %212 = vector.broadcast %cst_86 : f32 to vector<32x128xf32>
    %213 = arith.maximumf %211, %212 : vector<32x128xf32>
    %214 = arith.addf %163, %213 : vector<32x128xf32>
    %c0_87 = arith.constant 0 : index
    %c0_88 = arith.constant 0 : index
    %215 = vector.load %arg6[%c0_87, %c0_88] : memref<128x384xf32, #tpu.memory_space<vmem>>, vector<128x384xf32>
    %cst_89 = arith.constant dense<0.000000e+00> : vector<32x384xf32>
    %216 = tpu.matmul %214, %215, %cst_89 {dimension_numbers = #tpu.dot_dimension_numbers<[1], [0], [0], [1], [0, 0, 1, 1], [], []>} : vector<32x128xf32>, vector<128x384xf32>, vector<32x384xf32> -> vector<32x384xf32>
    %217 = vector.extract_strided_slice %216 {offsets = [0, 128], sizes = [32, 128], strides = [1, 1]} : vector<32x384xf32> to vector<32x128xf32>
    %218 = vector.extract_strided_slice %216 {offsets = [0, 0], sizes = [32, 128], strides = [1, 1]} : vector<32x384xf32> to vector<32x128xf32>
    %c1_i32_90 = arith.constant 1 : i32
    %219 = tpu.dynamic_rotate %218 by %c1_i32_90 dim 0 : vector<32x128xf32>, i32 -> vector<32x128xf32>
    %220 = arith.mulf %0, %219 : vector<32x128xf32>
    %221 = arith.addf %217, %220 : vector<32x128xf32>
    %222 = vector.extract_strided_slice %216 {offsets = [0, 256], sizes = [32, 128], strides = [1, 1]} : vector<32x384xf32> to vector<32x128xf32>
    %c31_i32_91 = arith.constant 31 : i32
    %223 = tpu.dynamic_rotate %222 by %c31_i32_91 dim 0 : vector<32x128xf32>, i32 -> vector<32x128xf32>
    %224 = arith.mulf %1, %223 : vector<32x128xf32>
    %225 = arith.addf %221, %224 : vector<32x128xf32>
    %cst_92 = arith.constant dense<0.000000e+00> : vector<128xf32>
    %226 = vector.multi_reduction <add>, %225, %cst_92 [0] : vector<32x128xf32> to vector<128xf32>
    %227 = vector.shape_cast %226 : vector<128xf32> to vector<1x128xf32>
    %c8_i32_93 = arith.constant 8 : i32
    %228 = tpu.dynamic_rotate %227 by %c8_i32_93 dim 1 : vector<1x128xf32>, i32 -> vector<1x128xf32>
    %229 = arith.addf %227, %228 : vector<1x128xf32>
    %c16_i32_94 = arith.constant 16 : i32
    %230 = tpu.dynamic_rotate %229 by %c16_i32_94 dim 1 : vector<1x128xf32>, i32 -> vector<1x128xf32>
    %231 = arith.addf %229, %230 : vector<1x128xf32>
    %c32_i32_95 = arith.constant 32 : i32
    %232 = tpu.dynamic_rotate %231 by %c32_i32_95 dim 1 : vector<1x128xf32>, i32 -> vector<1x128xf32>
    %233 = arith.addf %231, %232 : vector<1x128xf32>
    %c64_i32_96 = arith.constant 64 : i32
    %234 = tpu.dynamic_rotate %233 by %c64_i32_96 dim 1 : vector<1x128xf32>, i32 -> vector<1x128xf32>
    %235 = arith.addf %233, %234 : vector<1x128xf32>
    %cst_97 = arith.constant 0.001953125 : f32
    %236 = vector.broadcast %cst_97 : f32 to vector<1x128xf32>
    %237 = arith.mulf %235, %236 : vector<1x128xf32>
    %238 = arith.mulf %225, %225 : vector<32x128xf32>
    %cst_98 = arith.constant dense<0.000000e+00> : vector<128xf32>
    %239 = vector.multi_reduction <add>, %238, %cst_98 [0] : vector<32x128xf32> to vector<128xf32>
    %240 = vector.shape_cast %239 : vector<128xf32> to vector<1x128xf32>
    %c8_i32_99 = arith.constant 8 : i32
    %241 = tpu.dynamic_rotate %240 by %c8_i32_99 dim 1 : vector<1x128xf32>, i32 -> vector<1x128xf32>
    %242 = arith.addf %240, %241 : vector<1x128xf32>
    %c16_i32_100 = arith.constant 16 : i32
    %243 = tpu.dynamic_rotate %242 by %c16_i32_100 dim 1 : vector<1x128xf32>, i32 -> vector<1x128xf32>
    %244 = arith.addf %242, %243 : vector<1x128xf32>
    %c32_i32_101 = arith.constant 32 : i32
    %245 = tpu.dynamic_rotate %244 by %c32_i32_101 dim 1 : vector<1x128xf32>, i32 -> vector<1x128xf32>
    %246 = arith.addf %244, %245 : vector<1x128xf32>
    %c64_i32_102 = arith.constant 64 : i32
    %247 = tpu.dynamic_rotate %246 by %c64_i32_102 dim 1 : vector<1x128xf32>, i32 -> vector<1x128xf32>
    %248 = arith.addf %246, %247 : vector<1x128xf32>
    %cst_103 = arith.constant 0.001953125 : f32
    %249 = vector.broadcast %cst_103 : f32 to vector<1x128xf32>
    %250 = arith.mulf %248, %249 : vector<1x128xf32>
    %251 = arith.mulf %237, %237 : vector<1x128xf32>
    %252 = arith.subf %250, %251 : vector<1x128xf32>
    %cst_104 = arith.constant 9.99999974E-6 : f32
    %253 = vector.broadcast %cst_104 : f32 to vector<1x128xf32>
    %254 = arith.addf %252, %253 : vector<1x128xf32>
    %255 = math.rsqrt %254 : vector<1x128xf32>
    %256 = arith.mulf %4, %255 : vector<1x128xf32>
    %257 = arith.mulf %237, %256 : vector<1x128xf32>
    %258 = arith.subf %5, %257 : vector<1x128xf32>
    %259 = vector.broadcast %256 : vector<1x128xf32> to vector<32x128xf32>
    %260 = arith.mulf %225, %259 : vector<32x128xf32>
    %261 = vector.broadcast %258 : vector<1x128xf32> to vector<32x128xf32>
    %262 = arith.addf %260, %261 : vector<32x128xf32>
    %cst_105 = arith.constant 0.000000e+00 : f32
    %263 = vector.broadcast %cst_105 : f32 to vector<32x128xf32>
    %264 = arith.maximumf %262, %263 : vector<32x128xf32>
    %265 = arith.addf %163, %264 : vector<32x128xf32>
    %c0_106 = arith.constant 0 : index
    %c0_107 = arith.constant 0 : index
    %266 = vector.load %arg6[%c0_106, %c0_107] : memref<128x384xf32, #tpu.memory_space<vmem>>, vector<128x384xf32>
    %cst_108 = arith.constant dense<0.000000e+00> : vector<32x384xf32>
    %267 = tpu.matmul %265, %266, %cst_108 {dimension_numbers = #tpu.dot_dimension_numbers<[1], [0], [0], [1], [0, 0, 1, 1], [], []>} : vector<32x128xf32>, vector<128x384xf32>, vector<32x384xf32> -> vector<32x384xf32>
    %268 = vector.extract_strided_slice %267 {offsets = [0, 128], sizes = [32, 128], strides = [1, 1]} : vector<32x384xf32> to vector<32x128xf32>
    %269 = vector.extract_strided_slice %267 {offsets = [0, 0], sizes = [32, 128], strides = [1, 1]} : vector<32x384xf32> to vector<32x128xf32>
    %c1_i32_109 = arith.constant 1 : i32
    %270 = tpu.dynamic_rotate %269 by %c1_i32_109 dim 0 : vector<32x128xf32>, i32 -> vector<32x128xf32>
    %271 = arith.mulf %0, %270 : vector<32x128xf32>
    %272 = arith.addf %268, %271 : vector<32x128xf32>
    %273 = vector.extract_strided_slice %267 {offsets = [0, 256], sizes = [32, 128], strides = [1, 1]} : vector<32x384xf32> to vector<32x128xf32>
    %c31_i32_110 = arith.constant 31 : i32
    %274 = tpu.dynamic_rotate %273 by %c31_i32_110 dim 0 : vector<32x128xf32>, i32 -> vector<32x128xf32>
    %275 = arith.mulf %1, %274 : vector<32x128xf32>
    %276 = arith.addf %272, %275 : vector<32x128xf32>
    %cst_111 = arith.constant dense<0.000000e+00> : vector<128xf32>
    %277 = vector.multi_reduction <add>, %276, %cst_111 [0] : vector<32x128xf32> to vector<128xf32>
    %278 = vector.shape_cast %277 : vector<128xf32> to vector<1x128xf32>
    %c8_i32_112 = arith.constant 8 : i32
    %279 = tpu.dynamic_rotate %278 by %c8_i32_112 dim 1 : vector<1x128xf32>, i32 -> vector<1x128xf32>
    %280 = arith.addf %278, %279 : vector<1x128xf32>
    %c16_i32_113 = arith.constant 16 : i32
    %281 = tpu.dynamic_rotate %280 by %c16_i32_113 dim 1 : vector<1x128xf32>, i32 -> vector<1x128xf32>
    %282 = arith.addf %280, %281 : vector<1x128xf32>
    %c32_i32_114 = arith.constant 32 : i32
    %283 = tpu.dynamic_rotate %282 by %c32_i32_114 dim 1 : vector<1x128xf32>, i32 -> vector<1x128xf32>
    %284 = arith.addf %282, %283 : vector<1x128xf32>
    %c64_i32_115 = arith.constant 64 : i32
    %285 = tpu.dynamic_rotate %284 by %c64_i32_115 dim 1 : vector<1x128xf32>, i32 -> vector<1x128xf32>
    %286 = arith.addf %284, %285 : vector<1x128xf32>
    %cst_116 = arith.constant 0.001953125 : f32
    %287 = vector.broadcast %cst_116 : f32 to vector<1x128xf32>
    %288 = arith.mulf %286, %287 : vector<1x128xf32>
    %289 = arith.mulf %276, %276 : vector<32x128xf32>
    %cst_117 = arith.constant dense<0.000000e+00> : vector<128xf32>
    %290 = vector.multi_reduction <add>, %289, %cst_117 [0] : vector<32x128xf32> to vector<128xf32>
    %291 = vector.shape_cast %290 : vector<128xf32> to vector<1x128xf32>
    %c8_i32_118 = arith.constant 8 : i32
    %292 = tpu.dynamic_rotate %291 by %c8_i32_118 dim 1 : vector<1x128xf32>, i32 -> vector<1x128xf32>
    %293 = arith.addf %291, %292 : vector<1x128xf32>
    %c16_i32_119 = arith.constant 16 : i32
    %294 = tpu.dynamic_rotate %293 by %c16_i32_119 dim 1 : vector<1x128xf32>, i32 -> vector<1x128xf32>
    %295 = arith.addf %293, %294 : vector<1x128xf32>
    %c32_i32_120 = arith.constant 32 : i32
    %296 = tpu.dynamic_rotate %295 by %c32_i32_120 dim 1 : vector<1x128xf32>, i32 -> vector<1x128xf32>
    %297 = arith.addf %295, %296 : vector<1x128xf32>
    %c64_i32_121 = arith.constant 64 : i32
    %298 = tpu.dynamic_rotate %297 by %c64_i32_121 dim 1 : vector<1x128xf32>, i32 -> vector<1x128xf32>
    %299 = arith.addf %297, %298 : vector<1x128xf32>
    %cst_122 = arith.constant 0.001953125 : f32
    %300 = vector.broadcast %cst_122 : f32 to vector<1x128xf32>
    %301 = arith.mulf %299, %300 : vector<1x128xf32>
    %302 = arith.mulf %288, %288 : vector<1x128xf32>
    %303 = arith.subf %301, %302 : vector<1x128xf32>
    %cst_123 = arith.constant 9.99999974E-6 : f32
    %304 = vector.broadcast %cst_123 : f32 to vector<1x128xf32>
    %305 = arith.addf %303, %304 : vector<1x128xf32>
    %306 = math.rsqrt %305 : vector<1x128xf32>
    %307 = arith.mulf %4, %306 : vector<1x128xf32>
    %308 = arith.mulf %288, %307 : vector<1x128xf32>
    %309 = arith.subf %5, %308 : vector<1x128xf32>
    %310 = vector.broadcast %307 : vector<1x128xf32> to vector<32x128xf32>
    %311 = arith.mulf %276, %310 : vector<32x128xf32>
    %312 = vector.broadcast %309 : vector<1x128xf32> to vector<32x128xf32>
    %313 = arith.addf %311, %312 : vector<32x128xf32>
    %cst_124 = arith.constant 0.000000e+00 : f32
    %314 = vector.broadcast %cst_124 : f32 to vector<32x128xf32>
    %315 = arith.maximumf %313, %314 : vector<32x128xf32>
    %316 = arith.addf %11, %315 : vector<32x128xf32>
    %c0_125 = arith.constant 0 : index
    %c0_126 = arith.constant 0 : index
    %317 = vector.load %arg11[%c0_125, %c0_126] : memref<32x128xf32, #tpu.memory_space<vmem>>, vector<32x128xf32>
    tpu.vector_store %arg11[%c0_125, %c0_126], %316 {strides = array<i32>} : memref<32x128xf32, #tpu.memory_space<vmem>>, vector<32x128xf32>,
    return
  }
}

</mosaic_0001>

<bundles_post_ra>
// kernel: tpu_custom_call.1
= control target key start
LH: loop header
LB: loop body
LE: loop exit
PB: predicated region body
PF: predicated region fallthrough
CT: control target
= control target key end

     0   :  { %16 = vsyncpa [#allocation3], 0  ;;  %s2878_s0 = inlined_call_operand.hbm [shape: f32[32,64], index: 0, kind: input, shape index: {}]   ;;  %s2879_s1 = inlined_call_operand.hbm [shape: f32[64,128], index: 1, kind: input, shape index: {}]   ;;  %s2880_s2 = inlined_call_operand.vmem [shape: f32[1,128], index: 2, kind: input, shape index: {}]   ;;  %s2881_s3 = inlined_call_operand.hbm [shape: f32[128,384], index: 3, kind: input, shape index: {}]   ;;  %s2882_s4 = inlined_call_operand.vmem [shape: f32[1,128], index: 4, kind: input, shape index: {}]   ;;  %s2883_s5 = inlined_call_operand.vmem [shape: f32[1,128], index: 5, kind: input, shape index: {}]   ;;  %s2884_s6 = inlined_call_operand.hbm [shape: f32[128,384], index: 6, kind: input, shape index: {}]   ;;  %s2885_s7 = inlined_call_operand.vmem [shape: f32[1,128], index: 7, kind: input, shape index: {}]   ;;  %s2886_s8 = inlined_call_operand.vmem [shape: f32[1,128], index: 8, kind: input, shape index: {}]   ;;  %s2887_s9 = inlined_call_operand.hbm [shape: f32[32,128], index: 9, kind: input, shape index: {}]   ;;  %s2888_s10 = inlined_call_operand.hbm [shape: f32[32,128], index: 10, kind: input, shape index: {}]   ;;  %s2889_s11 = inlined_call_operand.hbm [shape: f32[32,128], index: 11, kind: output, shape index: {}]  }
   0x1   :  { %17 = vsyncpa [#allocation6], 0 }
   0x2   :  { %18 = vsyncpa [#allocation9], 0 }
   0x3   :  { %19 = vsyncpa [#allocation12], 0 }
   0x4   :  { %20 = vsyncpa [#allocation4], 0  ;;  %s38_s19 = sshll.u32 %s2879_s1, 4  ;;  %s1788_s20 = smov [#allocation5]   ;;  %s39_s19 = int_to_ptr.hbm [resolvable:$true] %s38_s19 }
   0x5   :  { %s40_s21 = sshll.u32 %s1788_s20, 4  ;;  %s1789_s22 = smov 128   ;;  %s41_s21 = int_to_ptr.vmem [resolvable:$true] %s40_s21 }
   0x6   :  { %s1790_s23 = smov 8   ;;  %s70_s26 = sshll.u32 %s2884_s6, 4  ;;  %s71_s26 = int_to_ptr.hbm [resolvable:$true] %s70_s26 }
   0x7   :  { %46 = dma.hbm_to_vmem [thread:$0]  %s39_s19, 1024, %s41_s21, [#allocation6], %s1789_s22, %s1789_s22, %s1790_s23  }
   0x8   :  { %s1791_s27 = smov [#allocation8]   ;;  %s25_s1 = sshll.u32 %s2878_s0, 4  ;;  %s26_s1 = int_to_ptr.hbm [resolvable:$true] %s25_s1 }
   0x9   :  { %s72_s28 = sshll.u32 %s1791_s27, 4  ;;  %s1792_s12 = smov 384   ;;  %s73_s28 = int_to_ptr.vmem [resolvable:$true] %s72_s28 }
   0xa   :  { %s1793_s13 = smov 24   ;;  %s53_s16 = sshll.u32 %s2881_s3, 4  ;;  %s54_s16 = int_to_ptr.hbm [resolvable:$true] %s53_s16 }
   0xb   :  { %78 = dma.hbm_to_vmem [thread:$0]  %s71_s26, 6144, %s73_s28, [#allocation9], %s1792_s12, %s1792_s12, %s1793_s13  }
   0xc   :  { %s1794_s17 = smov [#allocation2]   ;;  %s1795_s6 = smov [#allocation7]  }
   0xd   :  { %s27_s18 = sshll.u32 %s1794_s17, 4  ;;  %s55_s19 = sshll.u32 %s1795_s6, 4  ;;  %s28_s18 = int_to_ptr.vmem [resolvable:$true] %s27_s18  ;;  %s56_s19 = int_to_ptr.vmem [resolvable:$true] %s55_s19 }
   0xe   :  { %33 = dma.hbm_to_vmem [thread:$0]  %s26_s1, 512, %s28_s18, [#allocation3], %s1789_s22, %s1789_s22, %s1790_s23  }
   0xf   :  { %s87_s21 = sshll.u32 %s2887_s9, 4  ;;  %s100_s3 = sshll.u32 %s2888_s10, 4  ;;  %s88_s21 = int_to_ptr.hbm [resolvable:$true] %s87_s21  ;;  %s101_s3 = int_to_ptr.hbm [resolvable:$true] %s100_s3 }
  0x10   :  { %61 = dma.hbm_to_vmem [thread:$0]  %s54_s16, 6144, %s56_s19, [#allocation6], %s1792_s12, %s1792_s12, %s1793_s13  }
  0x11   :  { %s1796_s26 = smov [#allocation10]   ;;  %s1797_s28 = smov [#allocation11]  }
  0x12   :  { %s89_s27 = sshll.u32 %s1796_s26, 4  ;;  %s102_s29 = sshll.u32 %s1797_s28, 4  ;;  %s90_s27 = int_to_ptr.vmem [resolvable:$true] %s89_s27  ;;  %s103_s29 = int_to_ptr.vmem [resolvable:$true] %s102_s29 }
  0x13   :  { %95 = dma.hbm_to_vmem [thread:$0]  %s88_s21, 512, %s90_s27, [#allocation9], %s1789_s22, %s1789_s22, %s1790_s23  }
  0x14   :  { %108 = dma.hbm_to_vmem [thread:$0]  %s101_s3, 512, %s103_s29, [#allocation12], %s1789_s22, %s1789_s22, %s1790_s23  }
  0x15   :  { %1778 = dma.done.wait [#allocation3], 512  }
  0x16   :  { %1779 = vsyncadd [#allocation3], 4294966784 }
  0x17   :  { %1780 = dma.done.wait [#allocation6], 7168  }
  0x18   :  { %1781 = vsyncadd [#allocation6], 4294960128 }
  0x19   :  { %1782 = dma.done.wait [#allocation9], 6656  }
  0x1a   :  { %1783 = vsyncadd [#allocation9], 4294960640 }
  0x1b   :  { %1784 = dma.done.wait [#allocation12], 512  }
  0x1c   :  { %1785 = vsyncadd [#allocation12], 4294966784  ;;  %v156_v0 = vld [vmem:[#allocation5 + $0x38] sm:$0xff]  ;;  %v155_v1 = vld [vmem:[#allocation5 + $0x30] sm:$0xff]  ;;  %vm161_vm0 = vcmask 523264   ;;  %s1799_s30 = smov 32  }
  0x1d   :  { %182 = vmatpush.msra.mxu0 %v156_v0  ;;  %v154_v2 = vld [vmem:[#allocation5 + $0x28] sm:$0xff]  ;;  %v153_v3 = vld [vmem:[#allocation5 + $0x20] sm:$0xff]  ;;  %v152_v4 = vld [vmem:[#allocation5 + $0x18] sm:$0xff]  ;;  %s1800_s1 = smov 64   ;;  %s1539_s19 = sshll.u32 %s2889_s11, 4  ;;  %s1540_s19 = int_to_ptr.hbm [resolvable:$true] %s1539_s19 }
  0x1e   :  { %v151_v5 = vld [vmem:[#allocation5 + $0x10] sm:$0xff]  ;;  %v1892_v6 = vld [vmem:[#allocation7 + $0x168] sm:$0xff]  ;;  %v1896_v8 = vld [vmem:[#allocation7 + $0x178] sm:$0xff] }
  0x1f   :  { %183 = vmatpush.msra.mxu0 %v155_v1  ;;  %v1894_v7 = vld [vmem:[#allocation7 + $0x170] sm:$0xff]  ;;  %251 = vmatpush.msra.mxu1 %v1892_v6  ;;  %v1901_v10 = vld [vmem:[#allocation7 + $0x158] sm:$0xff]  ;;  %v1903_v11 = vld [vmem:[#allocation7 + $0x160] sm:$0xff] }
  0x20   :  { %v1899_v9 = vld [vmem:[#allocation7 + $0x150] sm:$0xff]  ;;  %v150_v12 = vld [vmem:[#allocation5 + $0x8] sm:$0xff]  ;;  %280 = vmatpush.msra.mxu2 %v1894_v7  ;;  %309 = vmatpush.msra.mxu3 %v1896_v8  ;;  %v1907_v13 = vld [vmem:[#allocation7 + $0x138] sm:$0xff] }
  0x21   :  { %184 = vmatpush.msra.mxu0 %v154_v2  ;;  %252 = vmatpush.msra.mxu1 %v1899_v9  ;;  %v1910_v14 = vld [vmem:[#allocation7 + $0x140] sm:$0xff]  ;;  %v1912_v15 = vld [vmem:[#allocation7 + $0x148] sm:$0xff]  ;;  %v1923_v20 = vld [vmem:[#allocation7 + $0x130] sm:$0xff] }
  0x22   :  { %v149_v16 = vld [vmem:[#allocation5] sm:$0xff]  ;;  %281 = vmatpush.msra.mxu2 %v1901_v10  ;;  %310 = vmatpush.msra.mxu3 %v1903_v11  ;;  %v1919_v19 = vld [vmem:[#allocation7 + $0x128] sm:$0xff]  ;;  %v1928_v22 = vld [vmem:[#allocation7 + $0x110] sm:$0xff] }
  0x23   :  { %185 = vmatpush.msra.mxu0 %v153_v3  ;;  %v1916_v17 = vld [vmem:[#allocation7 + $0x120] sm:$0xff]  ;;  %253 = vmatpush.msra.mxu1 %v1907_v13  ;;  %v1925_v21 = vld [vmem:[#allocation7 + $0x108] sm:$0xff]  ;;  %v1932_v23 = vld [vmem:[#allocation7 + $0x118] sm:$0xff] }
  0x24   :  { %v145_v18 = vld [vmem:[#allocation2] sm:$0xff]  ;;  %282 = vmatpush.msra.mxu2 %v1910_v14  ;;  %311 = vmatpush.msra.mxu3 %v1912_v15  ;;  %v1934_v24 = vld [vmem:[#allocation7 + $0xf0] sm:$0xff]  ;;  %v1938_v25 = vld [vmem:[#allocation7 + $0xf8] sm:$0xff] }
  0x25   :  { %186 = vmatpush.msra.mxu0 %v152_v4  ;;  %254 = vmatpush.msra.mxu1 %v1916_v17  ;;  %v1941_v26 = vld [vmem:[#allocation7 + $0x100] sm:$0xff]  ;;  %v1943_v27 = vld [vmem:[#allocation7 + $0xd8] sm:$0xff]  ;;  %v1951_v29 = vld [vmem:[#allocation7 + $0xe8] sm:$0xff] }
  0x26   :  { %283 = vmatpush.msra.mxu2 %v1919_v19  ;;  %312 = vmatpush.msra.mxu3 %v1923_v20  ;;  %v1948_v28 = vld [vmem:[#allocation7 + $0xe0] sm:$0xff]  ;;  %v146_v31 = vld [vmem:[#allocation2 + $0x8] sm:$0xff]  ;;  %v1961_v33 = vld [vmem:[#allocation7 + $0xd0] sm:$0xff] }
  0x27   :  { %187 = vmatpush.msra.mxu0 %v151_v5  ;;  %255 = vmatpush.msra.mxu1 %v1925_v21  ;;  %v1953_v30 = vld [vmem:[#allocation7 + $0xc0] sm:$0xff]  ;;  %v1958_v32 = vld [vmem:[#allocation7 + $0xc8] sm:$0xff]  ;;  %v1968_v35 = vld [vmem:[#allocation7 + $0xb0] sm:$0xff] }
  0x28   :  { %284 = vmatpush.msra.mxu2 %v1928_v22  ;;  %313 = vmatpush.msra.mxu3 %v1932_v23  ;;  %v1963_v34 = vld [vmem:[#allocation7 + $0xa8] sm:$0xff]  ;;  %v1972_v36 = vld [vmem:[#allocation7 + $0xb8] sm:$0xff]  ;;  %v1974_v37 = vld [vmem:[#allocation7 + $0x90] sm:$0xff] }
  0x29   :  { %188 = vmatpush.msra.mxu0 %v150_v12  ;;  %256 = vmatpush.msra.mxu1 %v1934_v24  ;;  %v1978_v38 = vld [vmem:[#allocation7 + $0x98] sm:$0xff]  ;;  %v1981_v39 = vld [vmem:[#allocation7 + $0xa0] sm:$0xff]  ;;  %v1991_v42 = vld [vmem:[#allocation7 + $0x88] sm:$0xff] }
  0x2a   :  { %285 = vmatpush.msra.mxu2 %v1938_v25  ;;  %314 = vmatpush.msra.mxu3 %v1941_v26  ;;  %v1983_v40 = vld [vmem:[#allocation7 + $0x78] sm:$0xff]  ;;  %v1988_v41 = vld [vmem:[#allocation7 + $0x80] sm:$0xff]  ;;  %v147_v44 = vld [vmem:[#allocation2 + $0x10] sm:$0xff] }
  0x2b   :  { %189 = vmatpush.msra.mxu0 %v149_v16  ;;  %257 = vmatpush.msra.mxu1 %v1943_v27  ;;  %v1993_v43 = vld [vmem:[#allocation7 + $0x60] sm:$0xff]  ;;  %v1998_v45 = vld [vmem:[#allocation7 + $0x68] sm:$0xff]  ;;  %v2001_v46 = vld [vmem:[#allocation7 + $0x70] sm:$0xff] }
  0x2c   :  { %1555 = vmatmul.msk.f32.vlgmr.msra.gmra.mxu0 %vm161_vm0, %v145_v18  ;;  %286 = vmatpush.msra.mxu2 %v1948_v28  ;;  %v2003_v47 = vld [vmem:[#allocation7 + $0x48] sm:$0xff]  ;;  %v2008_v48 = vld [vmem:[#allocation7 + $0x50] sm:$0xff]  ;;  %v2012_v49 = vld [vmem:[#allocation7 + $0x58] sm:$0xff] }
  0x2d   :  { %460 = vmatpush.msrb.mxu0 %v1892_v6  ;;  %315 = vmatpush.msra.mxu3 %v1951_v29  ;;  %v2014_v50 = vld [vmem:[#allocation7 + $0x30] sm:$0xff]  ;;  %v2018_v51 = vld [vmem:[#allocation7 + $0x38] sm:$0xff]  ;;  %v2021_v52 = vld [vmem:[#allocation7 + $0x40] sm:$0xff] }
  0x2e   :  { %258 = vmatpush.msra.mxu1 %v1953_v30  ;;  %287 = vmatpush.msra.mxu2 %v1958_v32  ;;  %v148_v53 = vld [vmem:[#allocation2 + $0x18] sm:$0xff]  ;;  %v2038_v55 = vld [vmem:[#allocation7 + $0x20] sm:$0xff]  ;;  %v2040_v56 = vld [vmem:[#allocation7 + $0x28] sm:$0xff] }
  0x2f   :  { %461 = vmatpush.msrb.mxu0 %v1899_v9  ;;  %316 = vmatpush.msra.mxu3 %v1961_v33  ;;  %v2036_v54 = vld [vmem:[#allocation7 + $0x18] sm:$0xff]  ;;  %v2045_v57 = vld [vmem:[#allocation7] sm:$0xff]  ;;  %v2047_v58 = vld [vmem:[#allocation7 + $0x8] sm:$0xff] }
  0x30   :  { %259 = vmatpush.msra.mxu1 %v1963_v34  ;;  %288 = vmatpush.msra.mxu2 %v1968_v35  ;;  %v2049_v59 = vld [vmem:[#allocation7 + $0x10] sm:$0xff]  ;;  %v1589_v60 = vld [vmem:[%s2880_s2] ss:$0 sm:$0xff]  ;;  %s1798_s2 = smov 16  }
  0x31   :  { %462 = vmatpush.msrb.mxu0 %v1907_v13  ;;  %317 = vmatpush.msra.mxu3 %v1972_v36 }
  0x32   :  { %260 = vmatpush.msra.mxu1 %v1974_v37  ;;  %289 = vmatpush.msra.mxu2 %v1978_v38 }
  0x33   :  { %463 = vmatpush.msrb.mxu0 %v1916_v17  ;;  %318 = vmatpush.msra.mxu3 %v1981_v39 }
  0x34   :  { %1556 = vmatmul.msk.f32.gmra.mxu0 %vm161_vm0, %v146_v31  ;;  %261 = vmatpush.msra.mxu1 %v1983_v40 }
  0x35   :  { %464 = vmatpush.msrb.mxu0 %v1925_v21  ;;  %290 = vmatpush.msra.mxu2 %v1988_v41 }
  0x36   :  { %319 = vmatpush.msra.mxu3 %v1991_v42  ;;  %262 = vmatpush.msra.mxu1 %v1993_v43 }
  0x37   :  { %465 = vmatpush.msrb.mxu0 %v1934_v24  ;;  %291 = vmatpush.msra.mxu2 %v1998_v45 }
  0x38   :  { %320 = vmatpush.msra.mxu3 %v2001_v46  ;;  %263 = vmatpush.msra.mxu1 %v2003_v47 }
  0x39   :  { %292 = vmatpush.msra.mxu2 %v2008_v48  ;;  %466 = vmatpush.msrb.mxu0 %v1943_v27 }
  0x3a   :  { %321 = vmatpush.msra.mxu3 %v2012_v49  ;;  %264 = vmatpush.msra.mxu1 %v2014_v50 }
  0x3b   :  { %293 = vmatpush.msra.mxu2 %v2018_v51  ;;  %467 = vmatpush.msrb.mxu0 %v1953_v30 }
  0x3c   :  { %1557 = vmatmul.msk.f32.gmra.mxu0 %vm161_vm0, %v147_v44  ;;  %322 = vmatpush.msra.mxu3 %v2021_v52 }
  0x3d   :  { %468 = vmatpush.msrb.mxu0 %v1963_v34  ;;  %265 = vmatpush.msra.mxu1 %v2036_v54 }
  0x3e   :  { %294 = vmatpush.msra.mxu2 %v2038_v55  ;;  %323 = vmatpush.msra.mxu3 %v2040_v56 }
  0x3f   :  { %469 = vmatpush.msrb.mxu0 %v1974_v37  ;;  %266 = vmatpush.msra.mxu1 %v2045_v57 }
  0x40   :  { %295 = vmatpush.msra.mxu2 %v2047_v58  ;;  %324 = vmatpush.msra.mxu3 %v2049_v59 }
  0x41   :  { %470 = vmatpush.msrb.mxu0 %v1983_v40  ;;  %489 = vmatpush.msrb.mxu1 %v1894_v7 }
  0x42   :  { %518 = vmatpush.msrb.mxu2 %v1896_v8  ;;  %665 = vmatpush.msrb.mxu3 %v1892_v6 }
  0x43   :  { %471 = vmatpush.msrb.mxu0 %v1993_v43  ;;  %490 = vmatpush.msrb.mxu1 %v1901_v10 }
  0x44   :  { %1558 = vmatmul.msk.f32.gmra.mxu0 %vm161_vm0, %v148_v53  ;;  %519 = vmatpush.msrb.mxu2 %v1903_v11 }
  0x45   :  { %472 = vmatpush.msrb.mxu0 %v2003_v47  ;;  %666 = vmatpush.msrb.mxu3 %v1899_v9  ;;  %v342_v9 = vlaneseq }
  0x46   :  { %520 = vmatpush.msrb.mxu2 %v1912_v15  ;;  %491 = vmatpush.msrb.mxu1 %v1910_v14 }
  0x47   :  { %473 = vmatpush.msrb.mxu0 %v2014_v50  ;;  %667 = vmatpush.msrb.mxu3 %v1907_v13  ;;  %v2159_v13 = vshrl.u32 %v342_v9, 7 }
  0x48   :  { %521 = vmatpush.msrb.mxu2 %v1923_v20  ;;  %492 = vmatpush.msrb.mxu1 %v1919_v19 }
  0x49   :  { %474 = vmatpush.msrb.mxu0 %v2036_v54  ;;  %668 = vmatpush.msrb.mxu3 %v1916_v17  ;;  %vm344_vm1 = vcmp.lt.s32.totalorder %v2159_v13, 1  ;;  %vm361_vm2 = vcmp.lt.s32.totalorder %v2159_v13, 7 }
  0x4a   :  { %522 = vmatpush.msrb.mxu2 %v1932_v23  ;;  %493 = vmatpush.msrb.mxu1 %v1928_v22 }
  0x4b   :  { %475 = vmatpush.msrb.mxu0 %v2045_v57  ;;  %669 = vmatpush.msrb.mxu3 %v1925_v21 }
  0x4c   :  { %523 = vmatpush.msrb.mxu2 %v1941_v26  ;;  %494 = vmatpush.msrb.mxu1 %v1938_v25 }
  0x4d   :  { %694 = vmatpush.msra.mxu0 %v1894_v7  ;;  %670 = vmatpush.msrb.mxu3 %v1934_v24 }
  0x4e   :  { %524 = vmatpush.msrb.mxu2 %v1951_v29  ;;  %495 = vmatpush.msrb.mxu1 %v1948_v28 }
  0x4f   :  { %695 = vmatpush.msra.mxu0 %v1901_v10  ;;  %671 = vmatpush.msrb.mxu3 %v1943_v27  ;;  %v2169_v27 = vld [vmem:[#allocation11 + $0x8] sm:$0xff] }
  0x50   :  { %525 = vmatpush.msrb.mxu2 %v1961_v33  ;;  %496 = vmatpush.msrb.mxu1 %v1958_v32 }
  0x51   :  { %696 = vmatpush.msra.mxu0 %v1910_v14  ;;  %672 = vmatpush.msrb.mxu3 %v1953_v30  ;;  %v2174_v30 = vld [vmem:[#allocation11] sm:$0xff] }
  0x52   :  { %526 = vmatpush.msrb.mxu2 %v1972_v36  ;;  %497 = vmatpush.msrb.mxu1 %v1968_v35 }
  0x53   :  { %697 = vmatpush.msra.mxu0 %v1919_v19  ;;  %673 = vmatpush.msrb.mxu3 %v1963_v34 }
  0x54   :  { %527 = vmatpush.msrb.mxu2 %v1981_v39  ;;  %498 = vmatpush.msrb.mxu1 %v1978_v38 }
  0x55   :  { %698 = vmatpush.msra.mxu0 %v1928_v22  ;;  %674 = vmatpush.msrb.mxu3 %v1974_v37 }
  0x56   :  { %528 = vmatpush.msrb.mxu2 %v1991_v42  ;;  %499 = vmatpush.msrb.mxu1 %v1988_v41 }
  0x57   :  { %699 = vmatpush.msra.mxu0 %v1938_v25  ;;  %675 = vmatpush.msrb.mxu3 %v1983_v40  ;;  %v2167_v25 = vld [vmem:[#allocation10] sm:$0xff] }
  0x58   :  { %529 = vmatpush.msrb.mxu2 %v2001_v46  ;;  %500 = vmatpush.msrb.mxu1 %v1998_v45 }
  0x59   :  { %700 = vmatpush.msra.mxu0 %v1948_v28  ;;  %676 = vmatpush.msrb.mxu3 %v1993_v43 }
  0x5a   :  { %530 = vmatpush.msrb.mxu2 %v2012_v49  ;;  %501 = vmatpush.msrb.mxu1 %v2008_v48 }
  0x5b   :  { %701 = vmatpush.msra.mxu0 %v1958_v32  ;;  %677 = vmatpush.msrb.mxu3 %v2003_v47  ;;  %v2178_v32 = vld [vmem:[#allocation10 + $0x10] sm:$0xff] }
  0x5c   :  { %531 = vmatpush.msrb.mxu2 %v2021_v52  ;;  %502 = vmatpush.msrb.mxu1 %v2018_v51  ;;  %v2195_v47 = vld [vmem:[#allocation11 + $0x10] sm:$0xff] }
  0x5d   :  { %702 = vmatpush.msra.mxu0 %v1968_v35  ;;  %678 = vmatpush.msrb.mxu3 %v2014_v50 }
  0x5e   :  { %532 = vmatpush.msrb.mxu2 %v2040_v56  ;;  %503 = vmatpush.msrb.mxu1 %v2038_v55 }
  0x5f   :  { %703 = vmatpush.msra.mxu0 %v1978_v38  ;;  %679 = vmatpush.msrb.mxu3 %v2036_v54 }
  0x60   :  { %533 = vmatpush.msrb.mxu2 %v2049_v59  ;;  %504 = vmatpush.msrb.mxu1 %v2047_v58 }
  0x61   :  { %704 = vmatpush.msra.mxu0 %v1988_v41  ;;  %680 = vmatpush.msrb.mxu3 %v2045_v57 }
  0x63   :  { %705 = vmatpush.msra.mxu0 %v1998_v45 }
  0x65   :  { %706 = vmatpush.msra.mxu0 %v2008_v48  ;;  %v2197_v48 = vld [vmem:[#allocation11 + $0x18] sm:$0xff] }
  0x67   :  { %707 = vmatpush.msra.mxu0 %v2018_v51 }
  0x69   :  { %708 = vmatpush.msra.mxu0 %v2038_v55 }
  0x6b   :  { %709 = vmatpush.msra.mxu0 %v2047_v58 }
  0xa9   :  { %v191_v61 = vpop.f32.mrf.mxu0 }
  0xaa   :  { %v2117_v62 = vadd.f32 %v1589_v60, %v191_v61 }
  0xac   :  { %267 = vmatmul.f32.vlgmr.msra.gmra.mxu1 %v2117_v62  ;;  %296 = vmatmul.f32.vlgmr.msra.gmra.mxu2 %v2117_v62 }
  0xad   :  { %325 = vmatmul.f32.vlgmr.msra.gmra.mxu3 %v2117_v62  ;;  %723 = vmatpush.msra.mxu1 %v1896_v8 }
  0xaf   :  { %724 = vmatpush.msra.mxu1 %v1903_v11 }
  0xb1   :  { %v194_v63 = vpop.f32.mrf.mxu0  ;;  %725 = vmatpush.msra.mxu1 %v1912_v15 }
  0xb2   :  { %v2131_v0 = vadd.f32 %v1589_v60, %v194_v63 }
  0xb3   :  { %726 = vmatpush.msra.mxu1 %v1923_v20  ;;  %v2162_v20 = vld [vmem:[#allocation10 + $0x8] sm:$0xff] }
  0xb4   :  { %270 = vmatmul.f32.gmra.mxu1 %v2131_v0  ;;  %299 = vmatmul.f32.gmra.mxu2 %v2131_v0 }
  0xb5   :  { %328 = vmatmul.f32.gmra.mxu3 %v2131_v0  ;;  %727 = vmatpush.msra.mxu1 %v1932_v23 }
  0xb7   :  { %728 = vmatpush.msra.mxu1 %v1941_v26 }
  0xb9   :  { %v197_v1 = vpop.f32.mrf.mxu0  ;;  %729 = vmatpush.msra.mxu1 %v1951_v29 }
  0xba   :  { %v2140_v2 = vadd.f32 %v1589_v60, %v197_v1 }
  0xbb   :  { %730 = vmatpush.msra.mxu1 %v1961_v33 }
  0xbc   :  { %273 = vmatmul.f32.gmra.mxu1 %v2140_v2  ;;  %302 = vmatmul.f32.gmra.mxu2 %v2140_v2 }
  0xbd   :  { %331 = vmatmul.f32.gmra.mxu3 %v2140_v2  ;;  %731 = vmatpush.msra.mxu1 %v1972_v36  ;;  %v2185_v36 = vld [vmem:[#allocation10 + $0x18] sm:$0xff] }
  0xbf   :  { %732 = vmatpush.msra.mxu1 %v1981_v39 }
  0xc1   :  { %v200_v3 = vpop.f32.mrf.mxu0  ;;  %733 = vmatpush.msra.mxu1 %v1991_v42 }
  0xc2   :  { %v2149_v4 = vadd.f32 %v1589_v60, %v200_v3 }
  0xc3   :  { %734 = vmatpush.msra.mxu1 %v2001_v46 }
  0xc4   :  { %276 = vmatmul.f32.gmra.mxu1 %v2149_v4  ;;  %305 = vmatmul.f32.gmra.mxu2 %v2149_v4 }
  0xc5   :  { %334 = vmatmul.f32.gmra.mxu3 %v2149_v4  ;;  %735 = vmatpush.msra.mxu1 %v2012_v49 }
  0xc7   :  { %736 = vmatpush.msra.mxu1 %v2021_v52 }
  0xc9   :  { %737 = vmatpush.msra.mxu1 %v2040_v56 }
  0xcb   :  { %738 = vmatpush.msra.mxu1 %v2049_v59 }
 0x129   :  { %v268_v5 = vpop.f32.mrf.mxu1 }
 0x12a   :  { %v338_v15 = vrot.slane %v268_v5, 7 }
 0x12f   :  { %v297_v6 = vpop.f32.mrf.mxu2 }
 0x130   :  { %v326_v7 = vpop.f32.mrf.mxu3 }
 0x131   :  { %v271_v8 = vpop.f32.mrf.mxu1  ;;  %v357_v24 = vrot.slane %v326_v7, 1 }
 0x132   :  { %v339_v14 = vrot.slane %v271_v8, 7 }
 0x134   :  { %v347_v21 = vsel %vm344_vm1, %v338_v15, %v339_v14 }
 0x135   :  { %v350_v29 = vmul.f32 %v347_v21, %v2162_v20 }
 0x137   :  { %v300_v10 = vpop.f32.mrf.mxu2 }
 0x138   :  { %v329_v11 = vpop.f32.mrf.mxu3  ;;  %v354_v42 = vadd.f32 %v350_v29, %v300_v10 }
 0x139   :  { %v274_v12 = vpop.f32.mrf.mxu1  ;;  %v358_v17 = vrot.slane %v329_v11, 1 }
 0x13a   :  { %v340_v18 = vrot.slane %v274_v12, 7 }
 0x13b   :  { %v364_v31 = vsel %vm361_vm2, %v357_v24, %v358_v17 }
 0x13c   :  { %v346_v33 = vsel %vm344_vm1, %v339_v14, %v340_v18  ;;  %v366_v39 = vmul.f32 %v364_v31, %v2174_v30 }
 0x13d   :  { %v351_v40 = vmul.f32 %v346_v33, %v2178_v32 }
 0x13f   :  { %v303_v16 = vpop.f32.mrf.mxu2 }
 0x140   :  { %v332_v19 = vpop.f32.mrf.mxu3  ;;  %v355_v51 = vadd.f32 %v351_v40, %v303_v16 }
 0x141   :  { %v359_v22 = vrot.slane %v332_v19, 1  ;;  %v277_v23 = vpop.f32.mrf.mxu1 }
 0x142   :  { %v341_v26 = vrot.slane %v277_v23, 7 }
 0x143   :  { %v363_v28 = vsel %vm361_vm2, %v358_v17, %v359_v22 }
 0x144   :  { %v348_v34 = vsel %vm344_vm1, %v341_v26, %v338_v15  ;;  %v345_v37 = vsel %vm344_vm1, %v340_v18, %v341_v26  ;;  %v367_v38 = vmul.f32 %v363_v28, %v2169_v27 }
 0x145   :  { %v349_v35 = vmul.f32 %v348_v34, %v2167_v25  ;;  %v352_v43 = vmul.f32 %v345_v37, %v2185_v36 }
 0x146   :  { %v2199_v50 = vadd.f32 %v367_v38, %v354_v42 }
 0x147   :  { %v353_v41 = vadd.f32 %v349_v35, %v297_v6  ;;  %v306_v46 = vpop.f32.mrf.mxu2 }
 0x148   :  { %v335_v44 = vpop.f32.mrf.mxu3  ;;  %v356_v54 = vadd.f32 %v352_v43, %v306_v46  ;;  %v397_v58 = vmul.f32 %v2199_v50, %v2199_v50 }
 0x149   :  { %v2193_v45 = vadd.f32 %v366_v39, %v353_v41  ;;  %v360_v49 = vrot.slane %v335_v44, 1 }
 0x14b   :  { %v362_v52 = vsel %vm361_vm2, %v359_v22, %v360_v49  ;;  %v365_v53 = vsel %vm361_vm2, %v360_v49, %v357_v24  ;;  %v396_v57 = vmul.f32 %v2193_v45, %v2193_v45  ;;  %v374_v61 = vadd.f32 %v2199_v50, %v2193_v45 }
 0x14c   :  { %v368_v55 = vmul.f32 %v362_v52, %v2195_v47  ;;  %v369_v56 = vmul.f32 %v365_v53, %v2197_v48 }
 0x14d   :  { %v400_v3 = vadd.f32 %v397_v58, %v396_v57  ;;  %v2234_v58 = vld [vmem:[%s2882_s4] sm:$0x1] }
 0x14e   :  { %v2211_v59 = vadd.f32 %v368_v55, %v355_v51  ;;  %v2213_v60 = vadd.f32 %v369_v56, %v356_v54 }
 0x150   :  { %v375_v63 = vadd.f32 %v374_v61, %v2211_v59  ;;  %v398_v1 = vmul.f32 %v2211_v59, %v2211_v59  ;;  %v399_v6 = vmul.f32 %v2213_v60, %v2213_v60 }
 0x152   :  { %v376_v5 = vadd.f32 %v375_v63, %v2213_v60  ;;  %v401_v7 = vadd.f32 %v400_v3, %v398_v1  ;;  %v2240_v3 = vld [vmem:[%s2883_s5] sm:$0x1] }
 0x154   :  { %v377_v8 = vrot.slane %v376_v5, 4  ;;  %v402_v9 = vadd.f32 %v401_v7, %v399_v6 }
 0x156   :  { %v378_v10 = vadd.f32 %v377_v8, %v376_v5  ;;  %v403_v11 = vrot.slane %v402_v9, 4 }
 0x158   :  { %v379_v12 = vrot.slane %v378_v10, 2  ;;  %v404_v14 = vadd.f32 %v403_v11, %v402_v9 }
 0x15a   :  { %v380_v15 = vadd.f32 %v379_v12, %v378_v10  ;;  %v405_v16 = vrot.slane %v404_v14, 2 }
 0x15c   :  { %v381_v17 = vrot.slane %v380_v15, 1  ;;  %v406_v19 = vadd.f32 %v405_v16, %v404_v14 }
 0x15e   :  { %v382_v18 = vadd.f32 %v381_v17, %v380_v15  ;;  %v407_v21 = vrot.slane %v406_v19, 1 }
 0x160   :  { %383 = vrot.lane.b32.xlu0 %v382_v18, %s1790_s23  ;;  %v408_v22 = vadd.f32 %v407_v21, %v406_v19 }
 0x168   :  { %409 = vrot.lane.b32.xlu0 %v408_v22, %s1790_s23 }
 0x1d2   :  { %v384_v23 = vpop.permute.xlu0 %383 }
 0x1d3   :  { %v385_v24 = vadd.f32 %v384_v23, %v382_v18 }
 0x1d5   :  { %386 = vrot.lane.b32.xlu1 %v385_v24, %s1798_s2 }
 0x1da   :  { %v410_v26 = vpop.permute.xlu0 %409 }
 0x1db   :  { %v411_v28 = vadd.f32 %v410_v26, %v408_v22 }
 0x1dd   :  { %412 = vrot.lane.b32.xlu1 %v411_v28, %s1798_s2 }
 0x247   :  { %v387_v29 = vpop.permute.xlu1 %386 }
 0x248   :  { %v388_v31 = vadd.f32 %v387_v29, %v385_v24 }
 0x24a   :  { %389 = vrot.lane.b32.xlu2 %v388_v31, %s1799_s30 }
 0x24f   :  { %v413_v33 = vpop.permute.xlu1 %412 }
 0x250   :  { %v414_v34 = vadd.f32 %v413_v33, %v411_v28 }
 0x252   :  { %415 = vrot.lane.b32.xlu2 %v414_v34, %s1799_s30 }
 0x2a4   :  { %v390_v35 = vpop.permute.xlu2 %389 }
 0x2a5   :  { %v391_v37 = vadd.f32 %v390_v35, %v388_v31 }
 0x2a7   :  { %392 = vrot.lane.b32.xlu0 %v391_v37, %s1800_s1 }
 0x2ac   :  { %v416_v38 = vpop.permute.xlu2 %415 }
 0x2ad   :  { %v417_v39 = vadd.f32 %v416_v38, %v414_v34 }
 0x2af   :  { %418 = vrot.lane.b32.xlu1 %v417_v39, %s1800_s1 }
 0x319   :  { %v393_v40 = vpop.permute.xlu0 %392 }
 0x31a   :  { %v394_v41 = vadd.f32 %v393_v40, %v391_v37 }
 0x31c   :  { %v395_v42 = vmul.f32 0.001953125, %v394_v41 }
 0x31e   :  { %v422_v46 = vmul.f32 %v395_v42, %v395_v42 }
 0x321   :  { %v419_v43 = vpop.permute.xlu1 %418 }
 0x322   :  { %v420_v44 = vadd.f32 %v419_v43, %v417_v39 }
 0x324   :  { %v421_v49 = vmul.f32 0.001953125, %v420_v44 }
 0x326   :  { %v423_v51 = vsub.f32 %v421_v49, %v422_v46 }
 0x328   :  { %v424_v52 = vadd.f32 1e-05, %v423_v51 }
 0x32a   :  { %1590 = vrsqrt.f32 %v424_v52  ;;  %vm431_vm4 = vweird.f32 %v424_v52 }
 0x330   :  { %v1591_v53 = vpop.eup %1590 }
 0x331   :  { %v426_v54 = vmul.f32 %v1591_v53, %v424_v52  ;;  %vm432_vm3 = vweird.f32 %v1591_v53 }
 0x332   :  { %vm433_vm5 = vmor %vm431_vm4, %vm432_vm3 }
 0x333   :  { %v427_v55 = vmul.f32 %v1591_v53, %v426_v54 }
 0x335   :  { %v428_v56 = vmul.f32 0.5, %v427_v55 }
 0x337   :  { %v429_v57 = vsub.f32 1.5, %v428_v56 }
 0x339   :  { %v430_v61 = vmul.f32 %v1591_v53, %v429_v57 }
 0x33b   :  { %v434_v63 = vsel %vm433_vm5, %v1591_v53, %v430_v61 }
 0x33c   :  { %v435_v1 = vmul.f32 %v434_v63, %v2234_v58 }
 0x33e   :  { %v436_v5 = vmul.f32 %v435_v1, %v395_v42  ;;  %v439_v6 = vperm.slane %v435_v1, 0 }
 0x340   :  { %v437_v7 = vsub.f32 %v2240_v3, %v436_v5  ;;  %v441_v8 = vmul.f32 %v439_v6, %v2193_v45  ;;  %v442_v12 = vmul.f32 %v439_v6, %v2199_v50  ;;  %v443_v17 = vmul.f32 %v439_v6, %v2211_v59 }
 0x341   :  { %v444_v21 = vmul.f32 %v439_v6, %v2213_v60 }
 0x342   :  { %v446_v9 = vperm.slane %v437_v7, 0 }
 0x344   :  { %v448_v10 = vadd.f32 %v446_v9, %v441_v8  ;;  %v449_v15 = vadd.f32 %v446_v9, %v442_v12  ;;  %v450_v19 = vadd.f32 %v446_v9, %v443_v17  ;;  %v451_v22 = vadd.f32 %v446_v9, %v444_v21 }
 0x346   :  { %v452_v11 = vmax.f32 %v448_v10, 0.0  ;;  %v453_v16 = vmax.f32 %v449_v15, 0.0  ;;  %v454_v45 = vmax.f32 %v450_v19, 0.0  ;;  %v455_v23 = vmax.f32 %v451_v22, 0.0 }
 0x348   :  { %v456_v14 = vadd.f32 %v452_v11, %v2117_v62  ;;  %v457_v18 = vadd.f32 %v453_v16, %v2131_v0  ;;  %v458_v50 = vadd.f32 %v454_v45, %v2140_v2  ;;  %v459_v24 = vadd.f32 %v455_v23, %v2149_v4 }
 0x34a   :  { %476 = vmatmul.f32.vlgmr.msrb.gmra.mxu0 %v456_v14  ;;  %505 = vmatmul.f32.vlgmr.msrb.gmra.mxu1 %v456_v14 }
 0x34b   :  { %534 = vmatmul.f32.vlgmr.msrb.gmra.mxu2 %v456_v14 }
 0x352   :  { %479 = vmatmul.f32.gmra.mxu0 %v457_v18  ;;  %508 = vmatmul.f32.gmra.mxu1 %v457_v18 }
 0x353   :  { %537 = vmatmul.f32.gmra.mxu2 %v457_v18 }
 0x35a   :  { %482 = vmatmul.f32.gmra.mxu0 %v458_v50  ;;  %511 = vmatmul.f32.gmra.mxu1 %v458_v50 }
 0x35b   :  { %540 = vmatmul.f32.gmra.mxu2 %v458_v50 }
 0x362   :  { %485 = vmatmul.f32.gmra.mxu0 %v459_v24  ;;  %514 = vmatmul.f32.gmra.mxu1 %v459_v24 }
 0x363   :  { %543 = vmatmul.f32.gmra.mxu2 %v459_v24 }
 0x3c7   :  { %v477_v59 = vpop.f32.mrf.mxu0  ;;  %v506_v26 = vpop.f32.mrf.mxu1 }
 0x3c8   :  { %v547_v35 = vrot.slane %v477_v59, 7 }
 0x3ce   :  { %v535_v28 = vpop.f32.mrf.mxu2 }
 0x3cf   :  { %v480_v29 = vpop.f32.mrf.mxu0  ;;  %v509_v31 = vpop.f32.mrf.mxu1  ;;  %v563_v44 = vrot.slane %v535_v28, 1 }
 0x3d0   :  { %v548_v60 = vrot.slane %v480_v29, 7 }
 0x3d2   :  { %v553_v40 = vsel %vm344_vm1, %v547_v35, %v548_v60 }
 0x3d3   :  { %v556_v51 = vmul.f32 %v553_v40, %v2162_v20 }
 0x3d5   :  { %v560_v5 = vadd.f32 %v556_v51, %v509_v31 }
 0x3d6   :  { %v538_v33 = vpop.f32.mrf.mxu2 }
 0x3d7   :  { %v483_v34 = vpop.f32.mrf.mxu0  ;;  %v564_v37 = vrot.slane %v538_v33, 1  ;;  %v512_v41 = vpop.f32.mrf.mxu1 }
 0x3d8   :  { %v549_v38 = vrot.slane %v483_v34, 7 }
 0x3d9   :  { %v569_v52 = vsel %vm361_vm2, %v563_v44, %v564_v37 }
 0x3da   :  { %v552_v53 = vsel %vm344_vm1, %v548_v60, %v549_v38  ;;  %v571_v61 = vmul.f32 %v569_v52, %v2174_v30 }
 0x3db   :  { %v557_v63 = vmul.f32 %v552_v53, %v2178_v32 }
 0x3dd   :  { %v561_v11 = vadd.f32 %v557_v63, %v512_v41 }
 0x3de   :  { %v541_v39 = vpop.f32.mrf.mxu2 }
 0x3df   :  { %v565_v42 = vrot.slane %v541_v39, 1  ;;  %v486_v43 = vpop.f32.mrf.mxu0  ;;  %v515_v12 = vpop.f32.mrf.mxu1 }
 0x3e0   :  { %v550_v46 = vrot.slane %v486_v43, 7 }
 0x3e1   :  { %v568_v49 = vsel %vm361_vm2, %v564_v37, %v565_v42 }
 0x3e2   :  { %v554_v54 = vsel %vm344_vm1, %v550_v46, %v547_v35  ;;  %v551_v56 = vsel %vm344_vm1, %v549_v38, %v550_v46  ;;  %v572_v57 = vmul.f32 %v568_v49, %v2169_v27 }
 0x3e3   :  { %v555_v55 = vmul.f32 %v554_v54, %v2167_v25  ;;  %v558_v6 = vmul.f32 %v551_v56, %v2185_v36 }
 0x3e4   :  { %v2271_v10 = vadd.f32 %v572_v57, %v560_v5 }
 0x3e5   :  { %v559_v1 = vadd.f32 %v555_v55, %v506_v26  ;;  %v562_v16 = vadd.f32 %v558_v6, %v515_v12 }
 0x3e6   :  { %v544_v7 = vpop.f32.mrf.mxu2  ;;  %v602_v45 = vmul.f32 %v2271_v10, %v2271_v10 }
 0x3e7   :  { %v2269_v8 = vadd.f32 %v571_v61, %v559_v1  ;;  %v566_v9 = vrot.slane %v544_v7, 1 }
 0x3e9   :  { %v567_v14 = vsel %vm361_vm2, %v565_v42, %v566_v9  ;;  %v570_v15 = vsel %vm361_vm2, %v566_v9, %v563_v44  ;;  %v601_v19 = vmul.f32 %v2269_v8, %v2269_v8  ;;  %v579_v22 = vadd.f32 %v2271_v10, %v2269_v8 }
 0x3ea   :  { %v573_v17 = vmul.f32 %v567_v14, %v2195_v47  ;;  %v574_v18 = vmul.f32 %v570_v15, %v2197_v48 }
 0x3eb   :  { %v605_v59 = vadd.f32 %v602_v45, %v601_v19 }
 0x3ec   :  { %v2283_v21 = vadd.f32 %v573_v17, %v561_v11  ;;  %v2285_v50 = vadd.f32 %v574_v18, %v562_v16 }
 0x3ee   :  { %v580_v23 = vadd.f32 %v579_v22, %v2283_v21  ;;  %v603_v24 = vmul.f32 %v2283_v21, %v2283_v21  ;;  %v604_v28 = vmul.f32 %v2285_v50, %v2285_v50 }
 0x3f0   :  { %v581_v26 = vadd.f32 %v580_v23, %v2285_v50  ;;  %v606_v29 = vadd.f32 %v605_v59, %v603_v24 }
 0x3f2   :  { %v582_v31 = vrot.slane %v581_v26, 4  ;;  %v607_v33 = vadd.f32 %v606_v29, %v604_v28 }
 0x3f4   :  { %v583_v34 = vadd.f32 %v582_v31, %v581_v26  ;;  %v608_v60 = vrot.slane %v607_v33, 4 }
 0x3f6   :  { %v584_v35 = vrot.slane %v583_v34, 2  ;;  %v609_v37 = vadd.f32 %v608_v60, %v607_v33 }
 0x3f8   :  { %v585_v38 = vadd.f32 %v584_v35, %v583_v34  ;;  %v610_v39 = vrot.slane %v609_v37, 2 }
 0x3fa   :  { %v586_v40 = vrot.slane %v585_v38, 1  ;;  %v611_v41 = vadd.f32 %v610_v39, %v609_v37 }
 0x3fc   :  { %v587_v42 = vadd.f32 %v586_v40, %v585_v38  ;;  %v612_v43 = vrot.slane %v611_v41, 1 }
 0x3fe   :  { %588 = vrot.lane.b32.xlu2 %v587_v42, %s1790_s23  ;;  %v613_v44 = vadd.f32 %v612_v43, %v611_v41 }
 0x400   :  { %614 = vrot.lane.b32.xlu0 %v613_v44, %s1790_s23 }
 0x458   :  { %v589_v46 = vpop.permute.xlu2 %588 }
 0x459   :  { %v590_v49 = vadd.f32 %v589_v46, %v587_v42 }
 0x45b   :  { %591 = vrot.lane.b32.xlu1 %v590_v49, %s1798_s2 }
 0x472   :  { %v615_v51 = vpop.permute.xlu0 %614 }
 0x473   :  { %v616_v52 = vadd.f32 %v615_v51, %v613_v44 }
 0x475   :  { %617 = vrot.lane.b32.xlu2 %v616_v52, %s1798_s2 }
 0x4cd   :  { %v592_v53 = vpop.permute.xlu1 %591 }
 0x4ce   :  { %v593_v54 = vadd.f32 %v592_v53, %v590_v49 }
 0x4cf   :  { %v618_v55 = vpop.permute.xlu2 %617 }
 0x4d0   :  { %v619_v56 = vadd.f32 %v618_v55, %v616_v52  ;;  %594 = vrot.lane.b32.xlu0 %v593_v54, %s1799_s30 }
 0x4d2   :  { %620 = vrot.lane.b32.xlu1 %v619_v56, %s1799_s30 }
 0x542   :  { %v595_v57 = vpop.permute.xlu0 %594 }
 0x543   :  { %v596_v61 = vadd.f32 %v595_v57, %v593_v54 }
 0x544   :  { %v621_v63 = vpop.permute.xlu1 %620 }
 0x545   :  { %v622_v1 = vadd.f32 %v621_v63, %v619_v56  ;;  %597 = vrot.lane.b32.xlu2 %v596_v61, %s1800_s1 }
 0x547   :  { %623 = vrot.lane.b32.xlu0 %v622_v1, %s1800_s1 }
 0x59f   :  { %v598_v5 = vpop.permute.xlu2 %597 }
 0x5a0   :  { %v599_v6 = vadd.f32 %v598_v5, %v596_v61 }
 0x5a2   :  { %v600_v7 = vmul.f32 0.001953125, %v599_v6 }
 0x5a4   :  { %v627_v12 = vmul.f32 %v600_v7, %v600_v7 }
 0x5b9   :  { %v624_v9 = vpop.permute.xlu0 %623 }
 0x5ba   :  { %v625_v11 = vadd.f32 %v624_v9, %v622_v1 }
 0x5bc   :  { %v626_v14 = vmul.f32 0.001953125, %v625_v11 }
 0x5be   :  { %v628_v15 = vsub.f32 %v626_v14, %v627_v12 }
 0x5c0   :  { %v629_v16 = vadd.f32 1e-05, %v628_v15 }
 0x5c2   :  { %1592 = vrsqrt.f32 %v629_v16  ;;  %vm636_vm7 = vweird.f32 %v629_v16 }
 0x5c8   :  { %v1593_v17 = vpop.eup %1592 }
 0x5c9   :  { %v631_v18 = vmul.f32 %v1593_v17, %v629_v16  ;;  %vm637_vm6 = vweird.f32 %v1593_v17 }
 0x5ca   :  { %vm638_vm8 = vmor %vm636_vm7, %vm637_vm6 }
 0x5cb   :  { %v632_v19 = vmul.f32 %v1593_v17, %v631_v18 }
 0x5cd   :  { %v633_v45 = vmul.f32 0.5, %v632_v19 }
 0x5cf   :  { %v634_v22 = vsub.f32 1.5, %v633_v45 }
 0x5d1   :  { %v635_v23 = vmul.f32 %v1593_v17, %v634_v22 }
 0x5d3   :  { %v639_v24 = vsel %vm638_vm8, %v1593_v17, %v635_v23 }
 0x5d4   :  { %v640_v59 = vmul.f32 %v639_v24, %v2234_v58 }
 0x5d6   :  { %v641_v26 = vmul.f32 %v640_v59, %v600_v7  ;;  %v644_v28 = vperm.slane %v640_v59, 0 }
 0x5d8   :  { %v642_v29 = vsub.f32 %v2240_v3, %v641_v26  ;;  %v646_v31 = vmul.f32 %v644_v28, %v2269_v8  ;;  %v647_v35 = vmul.f32 %v644_v28, %v2271_v10  ;;  %v648_v40 = vmul.f32 %v644_v28, %v2283_v21 }
 0x5d9   :  { %v649_v43 = vmul.f32 %v644_v28, %v2285_v50 }
 0x5da   :  { %v651_v33 = vperm.slane %v642_v29, 0 }
 0x5dc   :  { %v653_v34 = vadd.f32 %v651_v33, %v646_v31  ;;  %v654_v38 = vadd.f32 %v651_v33, %v647_v35  ;;  %v655_v42 = vadd.f32 %v651_v33, %v648_v40  ;;  %v656_v44 = vadd.f32 %v651_v33, %v649_v43 }
 0x5de   :  { %v657_v60 = vmax.f32 %v653_v34, 0.0  ;;  %v658_v39 = vmax.f32 %v654_v38, 0.0  ;;  %v659_v8 = vmax.f32 %v655_v42, 0.0  ;;  %v660_v46 = vmax.f32 %v656_v44, 0.0 }
 0x5e0   :  { %v661_v37 = vadd.f32 %v657_v60, %v2117_v62  ;;  %v662_v41 = vadd.f32 %v658_v39, %v2131_v0  ;;  %v663_v10 = vadd.f32 %v659_v8, %v2140_v2  ;;  %v664_v49 = vadd.f32 %v660_v46, %v2149_v4 }
 0x5e2   :  { %681 = vmatmul.f32.vlgmr.msrb.gmra.mxu3 %v661_v37  ;;  %710 = vmatmul.f32.vlgmr.msra.gmra.mxu0 %v661_v37 }
 0x5e3   :  { %739 = vmatmul.f32.vlgmr.msra.gmra.mxu1 %v661_v37 }
 0x5ea   :  { %684 = vmatmul.f32.gmra.mxu3 %v662_v41  ;;  %713 = vmatmul.f32.gmra.mxu0 %v662_v41 }
 0x5eb   :  { %742 = vmatmul.f32.gmra.mxu1 %v662_v41 }
 0x5f2   :  { %687 = vmatmul.f32.gmra.mxu3 %v663_v10  ;;  %716 = vmatmul.f32.gmra.mxu0 %v663_v10 }
 0x5f3   :  { %745 = vmatmul.f32.gmra.mxu1 %v663_v10 }
 0x5fa   :  { %690 = vmatmul.f32.gmra.mxu3 %v664_v49  ;;  %719 = vmatmul.f32.gmra.mxu0 %v664_v49 }
 0x5fb   :  { %748 = vmatmul.f32.gmra.mxu1 %v664_v49 }
 0x65f   :  { %v711_v51 = vpop.f32.mrf.mxu0 }
 0x660   :  { %v740_v21 = vpop.f32.mrf.mxu1 }
 0x661   :  { %v768_v18 = vrot.slane %v740_v21, 1 }
 0x665   :  { %v682_v52 = vpop.f32.mrf.mxu3 }
 0x666   :  { %v752_v61 = vrot.slane %v682_v52, 7 }
 0x667   :  { %v714_v55 = vpop.f32.mrf.mxu0 }
 0x668   :  { %v743_v53 = vpop.f32.mrf.mxu1 }
 0x669   :  { %v769_v9 = vrot.slane %v743_v53, 1 }
 0x66b   :  { %v774_v24 = vsel %vm361_vm2, %v768_v18, %v769_v9 }
 0x66c   :  { %v776_v33 = vmul.f32 %v774_v24, %v2174_v30  ;;  %v2390_v24 = vld [vmem:[#allocation8 + $0x138] sm:$0xff] }
 0x66d   :  { %v685_v54 = vpop.f32.mrf.mxu3 }
 0x66e   :  { %v753_v50 = vrot.slane %v685_v54, 7 }
 0x66f   :  { %v717_v5 = vpop.f32.mrf.mxu0 }
 0x670   :  { %v746_v56 = vpop.f32.mrf.mxu1  ;;  %v758_v1 = vsel %vm344_vm1, %v752_v61, %v753_v50 }
 0x671   :  { %v770_v6 = vrot.slane %v746_v56, 1  ;;  %v761_v14 = vmul.f32 %v758_v1, %v2162_v20 }
 0x673   :  { %v773_v15 = vsel %vm361_vm2, %v769_v9, %v770_v6  ;;  %v765_v22 = vadd.f32 %v761_v14, %v714_v55 }
 0x674   :  { %v777_v23 = vmul.f32 %v773_v15, %v2169_v27 }
 0x675   :  { %v688_v57 = vpop.f32.mrf.mxu3 }
 0x676   :  { %v754_v63 = vrot.slane %v688_v57, 7  ;;  %v2336_v34 = vadd.f32 %v777_v23, %v765_v22  ;;  %v2382_v22 = vld [vmem:[#allocation8 + $0x158] sm:$0xff]  ;;  %v2384_v23 = vld [vmem:[#allocation8 + $0x160] sm:$0xff] }
 0x677   :  { %v720_v31 = vpop.f32.mrf.mxu0 }
 0x678   :  { %v749_v7 = vpop.f32.mrf.mxu1  ;;  %v757_v11 = vsel %vm344_vm1, %v753_v50, %v754_v63 }
 0x679   :  { %v771_v12 = vrot.slane %v749_v7, 1  ;;  %v762_v16 = vmul.f32 %v757_v11, %v2178_v32 }
 0x67b   :  { %v772_v19 = vsel %vm361_vm2, %v770_v6, %v771_v12  ;;  %v766_v26 = vadd.f32 %v762_v16, %v717_v5  ;;  %v775_v27 = vsel %vm361_vm2, %v771_v12, %v768_v18  ;;  %v2373_v18 = vld [vmem:[#allocation8 + $0x170] sm:$0xff] }
 0x67c   :  { %v778_v32 = vmul.f32 %v772_v19, %v2195_v47  ;;  %v779_v37 = vmul.f32 %v775_v27, %v2197_v48  ;;  %v2375_v19 = vld [vmem:[#allocation8 + $0x178] sm:$0xff]  ;;  %943 = vmatpush.msra.mxu3 %v2373_v18 }
 0x67d   :  { %v691_v17 = vpop.f32.mrf.mxu3  ;;  %972 = vmatpush.msrb.mxu0 %v2375_v19  ;;  %v2414_v27 = vld [vmem:[#allocation8 + $0x118] sm:$0xff] }
 0x67e   :  { %v755_v45 = vrot.slane %v691_v17, 7  ;;  %v2339_v38 = vadd.f32 %v778_v32, %v766_v26  ;;  %v2371_v17 = vld [vmem:[#allocation8 + $0x168] sm:$0xff]  ;;  %944 = vmatpush.msra.mxu3 %v2382_v22  ;;  %v2400_v26 = vld [vmem:[#allocation8 + $0x120] sm:$0xff] }
 0x67f   :  { %914 = vmatpush.msra.mxu2 %v2371_v17  ;;  %1119 = vmatpush.msrb.mxu1 %v2371_v17  ;;  %v2402_v32 = vld [vmem:[#allocation8 + $0x128] sm:$0xff] }
 0x680   :  { %v756_v20 = vsel %vm344_vm1, %v754_v63, %v755_v45  ;;  %v759_v59 = vsel %vm344_vm1, %v755_v45, %v752_v61  ;;  %v808_v48 = vmul.f32 %v2339_v38, %v2339_v38  ;;  %v2380_v45 = vld [vmem:[#allocation8 + $0x150] sm:$0xff]  ;;  %973 = vmatpush.msrb.mxu0 %v2384_v23 }
 0x681   :  { %v760_v28 = vmul.f32 %v759_v59, %v2167_v25  ;;  %v763_v29 = vmul.f32 %v756_v20, %v2185_v36  ;;  %v807_v25 = vmul.f32 %v2336_v34, %v2336_v34  ;;  %915 = vmatpush.msra.mxu2 %v2380_v45  ;;  %v2392_v20 = vld [vmem:[#allocation8 + $0x140] sm:$0xff]  ;;  %v2394_v59 = vld [vmem:[#allocation8 + $0x148] sm:$0xff]  ;;  %1120 = vmatpush.msrb.mxu1 %v2380_v45 }
 0x682   :  { %945 = vmatpush.msra.mxu3 %v2392_v20  ;;  %974 = vmatpush.msrb.mxu0 %v2394_v59 }
 0x683   :  { %v764_v60 = vadd.f32 %v760_v28, %v711_v51  ;;  %v767_v35 = vadd.f32 %v763_v29, %v720_v31  ;;  %916 = vmatpush.msra.mxu2 %v2390_v24  ;;  %v2404_v28 = vld [vmem:[#allocation8 + $0x130] sm:$0xff]  ;;  %1121 = vmatpush.msrb.mxu1 %v2390_v24  ;;  %v2410_v29 = vld [vmem:[#allocation8 + $0x108] sm:$0xff] }
 0x684   :  { %946 = vmatpush.msra.mxu3 %v2402_v32  ;;  %975 = vmatpush.msrb.mxu0 %v2404_v28  ;;  %v2412_v31 = vld [vmem:[#allocation8 + $0x110] sm:$0xff] }
 0x685   :  { %v2341_v39 = vadd.f32 %v776_v33, %v764_v60  ;;  %v2345_v36 = vadd.f32 %v779_v37, %v767_v35  ;;  %917 = vmatpush.msra.mxu2 %v2400_v26  ;;  %1122 = vmatpush.msrb.mxu1 %v2400_v26  ;;  %v2420_v33 = vld [vmem:[#allocation8 + $0xf0] sm:$0xff]  ;;  %v2422_v60 = vld [vmem:[#allocation8 + $0xf8] sm:$0xff]  ;;  %v2424_v35 = vld [vmem:[#allocation8 + $0x100] sm:$0xff] }
 0x686   :  { %947 = vmatpush.msra.mxu3 %v2412_v31  ;;  %976 = vmatpush.msrb.mxu0 %v2414_v27  ;;  %v2430_v37 = vld [vmem:[#allocation8 + $0xd8] sm:$0xff] }
 0x687   :  { %v784_v47 = vadd.f32 %v2336_v34, %v2341_v39  ;;  %v806_v30 = vmul.f32 %v2341_v39, %v2341_v39  ;;  %v809_v8 = vmul.f32 %v2345_v36, %v2345_v36  ;;  %918 = vmatpush.msra.mxu2 %v2410_v29  ;;  %1123 = vmatpush.msrb.mxu1 %v2410_v29 }
 0x688   :  { %948 = vmatpush.msra.mxu3 %v2422_v60  ;;  %977 = vmatpush.msrb.mxu0 %v2424_v35 }
 0x689   :  { %v785_v40 = vadd.f32 %v784_v47, %v2339_v38  ;;  %v810_v41 = vadd.f32 %v807_v25, %v806_v30  ;;  %919 = vmatpush.msra.mxu2 %v2420_v33  ;;  %v2432_v25 = vld [vmem:[#allocation8 + $0xe0] sm:$0xff]  ;;  %v2434_v47 = vld [vmem:[#allocation8 + $0xe8] sm:$0xff]  ;;  %1124 = vmatpush.msrb.mxu1 %v2420_v33 }
 0x68a   :  { %949 = vmatpush.msra.mxu3 %v2432_v25  ;;  %978 = vmatpush.msrb.mxu0 %v2434_v47  ;;  %v2440_v30 = vld [vmem:[#allocation8 + $0xc0] sm:$0xff] }
 0x68b   :  { %v786_v42 = vadd.f32 %v785_v40, %v2345_v36  ;;  %v811_v43 = vadd.f32 %v810_v41, %v808_v48  ;;  %920 = vmatpush.msra.mxu2 %v2430_v37  ;;  %v2442_v40 = vld [vmem:[#allocation8 + $0xc8] sm:$0xff]  ;;  %v2444_v48 = vld [vmem:[#allocation8 + $0xd0] sm:$0xff]  ;;  %1125 = vmatpush.msrb.mxu1 %v2430_v37 }
 0x68c   :  { %950 = vmatpush.msra.mxu3 %v2442_v40  ;;  %979 = vmatpush.msrb.mxu0 %v2444_v48  ;;  %v2450_v41 = vld [vmem:[#allocation8 + $0xa8] sm:$0xff] }
 0x68d   :  { %v787_v10 = vrot.slane %v786_v42, 4  ;;  %v812_v44 = vadd.f32 %v811_v43, %v809_v8  ;;  %921 = vmatpush.msra.mxu2 %v2440_v30  ;;  %v2454_v8 = vld [vmem:[#allocation8 + $0xb8] sm:$0xff]  ;;  %1126 = vmatpush.msrb.mxu1 %v2440_v30  ;;  %v2460_v43 = vld [vmem:[#allocation8 + $0x90] sm:$0xff] }
 0x68e   :  { %980 = vmatpush.msrb.mxu0 %v2454_v8 }
 0x68f   :  { %v788_v46 = vadd.f32 %v787_v10, %v786_v42  ;;  %v813_v49 = vrot.slane %v812_v44, 4  ;;  %v2452_v42 = vld [vmem:[#allocation8 + $0xb0] sm:$0xff]  ;;  %922 = vmatpush.msra.mxu2 %v2450_v41  ;;  %v2462_v10 = vld [vmem:[#allocation8 + $0x98] sm:$0xff]  ;;  %1127 = vmatpush.msrb.mxu1 %v2450_v41 }
 0x690   :  { %951 = vmatpush.msra.mxu3 %v2452_v42 }
 0x691   :  { %v789_v21 = vrot.slane %v788_v46, 2  ;;  %v814_v51 = vadd.f32 %v813_v49, %v812_v44  ;;  %v2464_v44 = vld [vmem:[#allocation8 + $0xa0] sm:$0xff]  ;;  %923 = vmatpush.msra.mxu2 %v2460_v43  ;;  %v2470_v49 = vld [vmem:[#allocation8 + $0x78] sm:$0xff]  ;;  %1128 = vmatpush.msrb.mxu1 %v2460_v43 }
 0x692   :  { %952 = vmatpush.msra.mxu3 %v2462_v10  ;;  %981 = vmatpush.msrb.mxu0 %v2464_v44 }
 0x693   :  { %v790_v52 = vadd.f32 %v789_v21, %v788_v46  ;;  %v815_v53 = vrot.slane %v814_v51, 2  ;;  %v2472_v21 = vld [vmem:[#allocation8 + $0x80] sm:$0xff]  ;;  %924 = vmatpush.msra.mxu2 %v2470_v49  ;;  %1129 = vmatpush.msrb.mxu1 %v2470_v49 }
 0x694   :  { %953 = vmatpush.msra.mxu3 %v2472_v21 }
 0x695   :  { %v791_v54 = vrot.slane %v790_v52, 1  ;;  %v816_v55 = vadd.f32 %v815_v53, %v814_v51  ;;  %v2474_v51 = vld [vmem:[#allocation8 + $0x88] sm:$0xff]  ;;  %v2480_v53 = vld [vmem:[#allocation8 + $0x60] sm:$0xff] }
 0x696   :  { %982 = vmatpush.msrb.mxu0 %v2474_v51  ;;  %925 = vmatpush.msra.mxu2 %v2480_v53 }
 0x697   :  { %v792_v56 = vadd.f32 %v791_v54, %v790_v52  ;;  %v817_v50 = vrot.slane %v816_v55, 1  ;;  %v2482_v54 = vld [vmem:[#allocation8 + $0x68] sm:$0xff]  ;;  %1130 = vmatpush.msrb.mxu1 %v2480_v53 }
 0x698   :  { %954 = vmatpush.msra.mxu3 %v2482_v54 }
 0x699   :  { %793 = vrot.lane.b32.xlu1 %v792_v56, %s1790_s23  ;;  %v818_v57 = vadd.f32 %v817_v50, %v816_v55  ;;  %v2484_v55 = vld [vmem:[#allocation8 + $0x70] sm:$0xff] }
 0x69a   :  { %983 = vmatpush.msrb.mxu0 %v2484_v55 }
 0x69b   :  { %819 = vrot.lane.b32.xlu2 %v818_v57, %s1790_s23 }
 0x6f5   :  { %v820_v61 = vpop.permute.xlu2 %819 }
 0x6f6   :  { %v821_v63 = vadd.f32 %v820_v61, %v818_v57  ;;  %v2492_v57 = vld [vmem:[#allocation8 + $0x48] sm:$0xff]  ;;  %v2494_v61 = vld [vmem:[#allocation8 + $0x50] sm:$0xff] }
 0x6f7   :  { %926 = vmatpush.msra.mxu2 %v2492_v57  ;;  %955 = vmatpush.msra.mxu3 %v2494_v61 }
 0x6f8   :  { %822 = vrot.lane.b32.xlu1 %v821_v63, %s1798_s2  ;;  %1131 = vmatpush.msrb.mxu1 %v2492_v57 }
 0x70b   :  { %v794_v1 = vpop.permute.xlu1 %793 }
 0x70c   :  { %v795_v5 = vadd.f32 %v794_v1, %v792_v56 }
 0x70e   :  { %796 = vrot.lane.b32.xlu0 %v795_v5, %s1798_s2 }
 0x76a   :  { %v823_v6 = vpop.permute.xlu1 %822 }
 0x76b   :  { %v824_v7 = vadd.f32 %v823_v6, %v821_v63  ;;  %v2496_v63 = vld [vmem:[#allocation8 + $0x58] sm:$0xff] }
 0x76c   :  { %v2505_v6 = vld [vmem:[#allocation8 + $0x38] sm:$0xff]  ;;  %984 = vmatpush.msrb.mxu0 %v2496_v63 }
 0x76d   :  { %825 = vrot.lane.b32.xlu0 %v824_v7, %s1799_s30  ;;  %956 = vmatpush.msra.mxu3 %v2505_v6 }
 0x780   :  { %v797_v9 = vpop.permute.xlu0 %796 }
 0x781   :  { %v798_v11 = vadd.f32 %v797_v9, %v795_v5  ;;  %v2503_v5 = vld [vmem:[#allocation8 + $0x30] sm:$0xff]  ;;  %v2510_v9 = vld [vmem:[#allocation8 + $0x18] sm:$0xff] }
 0x782   :  { %927 = vmatpush.msra.mxu2 %v2503_v5  ;;  %1132 = vmatpush.msrb.mxu1 %v2503_v5 }
 0x783   :  { %799 = vrot.lane.b32.xlu2 %v798_v11, %s1799_s30 }
 0x784   :  { %928 = vmatpush.msra.mxu2 %v2510_v9  ;;  %1133 = vmatpush.msrb.mxu1 %v2510_v9 }
 0x7dd   :  { %v800_v12 = vpop.permute.xlu2 %799 }
 0x7de   :  { %v2363_v14 = vadd.f32 %v800_v12, %v798_v11  ;;  %v2512_v11 = vld [vmem:[#allocation8 + $0x20] sm:$0xff] }
 0x7df   :  { %v826_v15 = vpop.permute.xlu0 %825  ;;  %957 = vmatpush.msra.mxu3 %v2512_v11 }
 0x7e0   :  { %v2365_v16 = vadd.f32 %v826_v15, %v824_v7  ;;  %802 = vrot.lane.b32.xlu1 %v2363_v14, %s1800_s1  ;;  %v2507_v7 = vld [vmem:[#allocation8 + $0x40] sm:$0xff]  ;;  %v2519_v15 = vld [vmem:[#allocation8 + $0x28] sm:$0xff] }
 0x7e1   :  { %985 = vmatpush.msrb.mxu0 %v2507_v7 }
 0x7e2   :  { %828 = vrot.lane.b32.xlu2 %v2365_v16, %s1800_s1 }
 0x7e3   :  { %986 = vmatpush.msrb.mxu0 %v2519_v15 }
 0x83c   :  { %v829_v46 = vpop.permute.xlu2 %828 }
 0x83d   :  { %v830_v56 = vadd.f32 %v829_v46, %v2365_v16  ;;  %v2522_v16 = vld [vmem:[#allocation8] sm:$0xff]  ;;  %v2524_v46 = vld [vmem:[#allocation8 + $0x8] sm:$0xff] }
 0x83e   :  { %929 = vmatpush.msra.mxu2 %v2522_v16  ;;  %958 = vmatpush.msra.mxu3 %v2524_v46 }
 0x83f   :  { %v831_v12 = vmul.f32 0.001953125, %v830_v56  ;;  %v2529_v56 = vld [vmem:[#allocation8 + $0x10] sm:$0xff]  ;;  %1134 = vmatpush.msrb.mxu1 %v2522_v16 }
 0x840   :  { %987 = vmatpush.msrb.mxu0 %v2529_v56  ;;  %1177 = vmatpush.msrb.mxu3 %v2375_v19 }
 0x841   :  { %1148 = vmatpush.msrb.mxu2 %v2373_v18  ;;  %1353 = vmatpush.msra.mxu1 %v2373_v18 }
 0x842   :  { %1178 = vmatpush.msrb.mxu3 %v2384_v23  ;;  %1324 = vmatpush.msra.mxu0 %v2371_v17 }
 0x843   :  { %1149 = vmatpush.msrb.mxu2 %v2382_v22  ;;  %1354 = vmatpush.msra.mxu1 %v2382_v22 }
 0x844   :  { %1179 = vmatpush.msrb.mxu3 %v2394_v59  ;;  %1325 = vmatpush.msra.mxu0 %v2380_v45 }
 0x845   :  { %1150 = vmatpush.msrb.mxu2 %v2392_v20  ;;  %1355 = vmatpush.msra.mxu1 %v2392_v20 }
 0x846   :  { %1180 = vmatpush.msrb.mxu3 %v2404_v28  ;;  %1326 = vmatpush.msra.mxu0 %v2390_v24 }
 0x847   :  { %1151 = vmatpush.msrb.mxu2 %v2402_v32  ;;  %1356 = vmatpush.msra.mxu1 %v2402_v32 }
 0x848   :  { %1181 = vmatpush.msrb.mxu3 %v2414_v27  ;;  %1327 = vmatpush.msra.mxu0 %v2400_v26 }
 0x849   :  { %1152 = vmatpush.msrb.mxu2 %v2412_v31  ;;  %1357 = vmatpush.msra.mxu1 %v2412_v31 }
 0x84a   :  { %1182 = vmatpush.msrb.mxu3 %v2424_v35  ;;  %1328 = vmatpush.msra.mxu0 %v2410_v29 }
 0x84b   :  { %1153 = vmatpush.msrb.mxu2 %v2422_v60  ;;  %1358 = vmatpush.msra.mxu1 %v2422_v60 }
 0x84c   :  { %1183 = vmatpush.msrb.mxu3 %v2434_v47  ;;  %1329 = vmatpush.msra.mxu0 %v2420_v33 }
 0x84d   :  { %1154 = vmatpush.msrb.mxu2 %v2432_v25  ;;  %1359 = vmatpush.msra.mxu1 %v2432_v25 }
 0x84e   :  { %1184 = vmatpush.msrb.mxu3 %v2444_v48  ;;  %1330 = vmatpush.msra.mxu0 %v2430_v37 }
 0x84f   :  { %1155 = vmatpush.msrb.mxu2 %v2442_v40  ;;  %1360 = vmatpush.msra.mxu1 %v2442_v40 }
 0x850   :  { %1185 = vmatpush.msrb.mxu3 %v2454_v8  ;;  %1331 = vmatpush.msra.mxu0 %v2440_v30 }
 0x851   :  { %1156 = vmatpush.msrb.mxu2 %v2452_v42  ;;  %1361 = vmatpush.msra.mxu1 %v2452_v42 }
 0x852   :  { %v803_v52 = vpop.permute.xlu1 %802  ;;  %1186 = vmatpush.msrb.mxu3 %v2464_v44  ;;  %1332 = vmatpush.msra.mxu0 %v2450_v41 }
 0x853   :  { %v804_v50 = vadd.f32 %v803_v52, %v2363_v14  ;;  %1157 = vmatpush.msrb.mxu2 %v2462_v10  ;;  %1362 = vmatpush.msra.mxu1 %v2462_v10 }
 0x854   :  { %1187 = vmatpush.msrb.mxu3 %v2474_v51  ;;  %1333 = vmatpush.msra.mxu0 %v2460_v43 }
 0x855   :  { %v2499_v1 = vmul.f32 0.001953125, %v804_v50  ;;  %1158 = vmatpush.msrb.mxu2 %v2472_v21  ;;  %1363 = vmatpush.msra.mxu1 %v2472_v21 }
 0x856   :  { %1188 = vmatpush.msrb.mxu3 %v2484_v55  ;;  %1334 = vmatpush.msra.mxu0 %v2470_v49 }
 0x857   :  { %v832_v14 = vmul.f32 %v2499_v1, %v2499_v1  ;;  %1159 = vmatpush.msrb.mxu2 %v2482_v54  ;;  %1364 = vmatpush.msra.mxu1 %v2482_v54 }
 0x858   :  { %1189 = vmatpush.msrb.mxu3 %v2496_v63  ;;  %1335 = vmatpush.msra.mxu0 %v2480_v53 }
 0x859   :  { %v833_v52 = vsub.f32 %v831_v12, %v832_v14  ;;  %1160 = vmatpush.msrb.mxu2 %v2494_v61  ;;  %1365 = vmatpush.msra.mxu1 %v2494_v61 }
 0x85a   :  { %1190 = vmatpush.msrb.mxu3 %v2507_v7  ;;  %1336 = vmatpush.msra.mxu0 %v2492_v57 }
 0x85b   :  { %v834_v50 = vadd.f32 1e-05, %v833_v52  ;;  %1161 = vmatpush.msrb.mxu2 %v2505_v6  ;;  %1366 = vmatpush.msra.mxu1 %v2505_v6 }
 0x85c   :  { %1191 = vmatpush.msrb.mxu3 %v2519_v15  ;;  %1337 = vmatpush.msra.mxu0 %v2503_v5 }
 0x85d   :  { %1594 = vrsqrt.f32 %v834_v50  ;;  %vm841_vm10 = vweird.f32 %v834_v50  ;;  %1162 = vmatpush.msrb.mxu2 %v2512_v11  ;;  %1367 = vmatpush.msra.mxu1 %v2512_v11 }
 0x85e   :  { %1192 = vmatpush.msrb.mxu3 %v2529_v56  ;;  %1338 = vmatpush.msra.mxu0 %v2510_v9 }
 0x85f   :  { %1163 = vmatpush.msrb.mxu2 %v2524_v46  ;;  %1368 = vmatpush.msra.mxu1 %v2524_v46 }
 0x860   :  { %1339 = vmatpush.msra.mxu0 %v2522_v16 }
 0x863   :  { %v1595_v12 = vpop.eup %1594 }
 0x864   :  { %v836_v17 = vmul.f32 %v1595_v12, %v834_v50  ;;  %vm842_vm9 = vweird.f32 %v1595_v12  ;;  %v2683_v50 = vld [vmem:[#allocation11 + $0x10] sm:$0xff] }
 0x865   :  { %vm843_vm11 = vmor %vm841_vm10, %vm842_vm9 }
 0x866   :  { %v837_v45 = vmul.f32 %v1595_v12, %v836_v17  ;;  %v2686_v17 = vld [vmem:[#allocation10] sm:$0xff] }
 0x868   :  { %v838_v24 = vmul.f32 0.5, %v837_v45 }
 0x86a   :  { %v839_v26 = vsub.f32 1.5, %v838_v24  ;;  %v2689_v24 = vld [vmem:[#allocation10 + $0x18] sm:$0xff] }
 0x86c   :  { %v840_v29 = vmul.f32 %v1595_v12, %v839_v26 }
 0x86e   :  { %v844_v33 = vsel %vm843_vm11, %v1595_v12, %v840_v29 }
 0x86f   :  { %v845_v37 = vmul.f32 %v844_v33, %v2234_v58 }
 0x871   :  { %v846_v30 = vmul.f32 %v845_v37, %v2499_v1  ;;  %v849_v14 = vperm.slane %v845_v37, 0  ;;  %v2694_v37 = vld [vmem:[#allocation11] sm:$0xff] }
 0x873   :  { %v847_v58 = vsub.f32 %v2240_v3, %v846_v30  ;;  %v851_v43 = vmul.f32 %v849_v14, %v2341_v39  ;;  %v852_v39 = vmul.f32 %v849_v14, %v2336_v34 }
 0x875   :  { %v856_v41 = vperm.slane %v847_v58, 0 }
 0x877   :  { %v858_v49 = vadd.f32 %v856_v41, %v851_v43  ;;  %v859_v53 = vadd.f32 %v856_v41, %v852_v39  ;;  %v2703_v39 = vld [vmem:[#allocation11 + $0x18] sm:$0xff] }
 0x879   :  { %v2595_v3 = vmax.f32 %v858_v49, 0.0  ;;  %v2614_v34 = vmax.f32 %v859_v53, 0.0 }
 0x87b   :  { %930 = vmatmul.f32.vlgmr.msra.gmra.mxu2 %v2595_v3  ;;  %959 = vmatmul.f32.vlgmr.msra.gmra.mxu3 %v2595_v3 }
 0x87c   :  { %988 = vmatmul.f32.vlgmr.msrb.gmra.mxu0 %v2595_v3  ;;  %1382 = vmatpush.msra.mxu2 %v2375_v19 }
 0x87d   :  { %1559 = vmatpush.msra.mxu3 %v2373_v18  ;;  %v853_v18 = vmul.f32 %v849_v14, %v2339_v38  ;;  %v854_v38 = vmul.f32 %v849_v14, %v2345_v36 }
 0x87e   :  { %1383 = vmatpush.msra.mxu2 %v2384_v23 }
 0x87f   :  { %1560 = vmatpush.msra.mxu3 %v2382_v22  ;;  %v860_v19 = vadd.f32 %v856_v41, %v853_v18  ;;  %v861_v23 = vadd.f32 %v856_v41, %v854_v38 }
 0x880   :  { %1384 = vmatpush.msra.mxu2 %v2394_v59 }
 0x881   :  { %1561 = vmatpush.msra.mxu3 %v2392_v20  ;;  %v2628_v22 = vmax.f32 %v860_v19, 0.0  ;;  %v2641_v20 = vmax.f32 %v861_v23, 0.0 }
 0x882   :  { %1385 = vmatpush.msra.mxu2 %v2404_v28 }
 0x883   :  { %933 = vmatmul.f32.gmra.mxu2 %v2614_v34  ;;  %962 = vmatmul.f32.gmra.mxu3 %v2614_v34 }
 0x884   :  { %991 = vmatmul.f32.gmra.mxu0 %v2614_v34  ;;  %1562 = vmatpush.msra.mxu3 %v2402_v32 }
 0x885   :  { %1386 = vmatpush.msra.mxu2 %v2414_v27 }
 0x886   :  { %1563 = vmatpush.msra.mxu3 %v2412_v31 }
 0x887   :  { %1387 = vmatpush.msra.mxu2 %v2424_v35 }
 0x888   :  { %1564 = vmatpush.msra.mxu3 %v2422_v60 }
 0x889   :  { %1388 = vmatpush.msra.mxu2 %v2434_v47 }
 0x88a   :  { %1565 = vmatpush.msra.mxu3 %v2432_v25 }
 0x88b   :  { %936 = vmatmul.f32.gmra.mxu2 %v2628_v22  ;;  %965 = vmatmul.f32.gmra.mxu3 %v2628_v22 }
 0x88c   :  { %994 = vmatmul.f32.gmra.mxu0 %v2628_v22  ;;  %1389 = vmatpush.msra.mxu2 %v2444_v48 }
 0x88d   :  { %1566 = vmatpush.msra.mxu3 %v2442_v40 }
 0x88e   :  { %1390 = vmatpush.msra.mxu2 %v2454_v8 }
 0x88f   :  { %1567 = vmatpush.msra.mxu3 %v2452_v42 }
 0x890   :  { %1391 = vmatpush.msra.mxu2 %v2464_v44 }
 0x891   :  { %1568 = vmatpush.msra.mxu3 %v2462_v10 }
 0x892   :  { %1392 = vmatpush.msra.mxu2 %v2474_v51 }
 0x893   :  { %939 = vmatmul.f32.gmra.mxu2 %v2641_v20  ;;  %968 = vmatmul.f32.gmra.mxu3 %v2641_v20 }
 0x894   :  { %997 = vmatmul.f32.gmra.mxu0 %v2641_v20  ;;  %1569 = vmatpush.msra.mxu3 %v2472_v21 }
 0x895   :  { %1393 = vmatpush.msra.mxu2 %v2484_v55 }
 0x896   :  { %1570 = vmatpush.msra.mxu3 %v2482_v54  ;;  %v2664_v54 = vld [vmem:[#allocation10 + $0x8] sm:$0xff] }
 0x897   :  { %1394 = vmatpush.msra.mxu2 %v2496_v63 }
 0x898   :  { %1571 = vmatpush.msra.mxu3 %v2494_v61  ;;  %v2669_v61 = vld [vmem:[#allocation10 + $0x10] sm:$0xff] }
 0x899   :  { %1395 = vmatpush.msra.mxu2 %v2507_v7 }
 0x89a   :  { %1572 = vmatpush.msra.mxu3 %v2505_v6 }
 0x89b   :  { %1396 = vmatpush.msra.mxu2 %v2519_v15 }
 0x89c   :  { %1573 = vmatpush.msra.mxu3 %v2512_v11  ;;  %v2674_v11 = vld [vmem:[#allocation11 + $0x8] sm:$0xff] }
 0x89d   :  { %1397 = vmatpush.msra.mxu2 %v2529_v56 }
 0x89e   :  { %1574 = vmatpush.msra.mxu3 %v2524_v46 }
 0x8f9   :  { %v989_v36 = vpop.f32.mrf.mxu0 }
 0x8fa   :  { %v1017_v5 = vrot.slane %v989_v36, 1 }
 0x8fe   :  { %v931_v59 = vpop.f32.mrf.mxu2  ;;  %v960_v32 = vpop.f32.mrf.mxu3 }
 0x8ff   :  { %v1001_v47 = vrot.slane %v931_v59, 7 }
 0x901   :  { %v992_v28 = vpop.f32.mrf.mxu0 }
 0x902   :  { %v1018_v44 = vrot.slane %v992_v28, 1 }
 0x904   :  { %v1023_v16 = vsel %vm361_vm2, %v1017_v5, %v1018_v44 }
 0x905   :  { %v1025_v30 = vmul.f32 %v2694_v37, %v1023_v16 }
 0x906   :  { %v934_v31 = vpop.f32.mrf.mxu2  ;;  %v963_v27 = vpop.f32.mrf.mxu3 }
 0x907   :  { %v1002_v35 = vrot.slane %v934_v31, 7 }
 0x909   :  { %v995_v60 = vpop.f32.mrf.mxu0  ;;  %v1007_v48 = vsel %vm344_vm1, %v1001_v47, %v1002_v35 }
 0x90a   :  { %v1019_v42 = vrot.slane %v995_v60, 1  ;;  %v1010_v55 = vmul.f32 %v2664_v54, %v1007_v48 }
 0x90c   :  { %v1022_v57 = vsel %vm361_vm2, %v1018_v44, %v1019_v42  ;;  %v1014_v9 = vadd.f32 %v1010_v55, %v963_v27 }
 0x90d   :  { %v1026_v15 = vmul.f32 %v2674_v11, %v1022_v57 }
 0x90e   :  { %v937_v25 = vpop.f32.mrf.mxu2  ;;  %v966_v8 = vpop.f32.mrf.mxu3 }
 0x90f   :  { %v1003_v40 = vrot.slane %v937_v25, 7  ;;  %v2697_v14 = vadd.f32 %v1026_v15, %v1014_v9 }
 0x911   :  { %v998_v10 = vpop.f32.mrf.mxu0  ;;  %v1006_v21 = vsel %vm344_vm1, %v1002_v35, %v1003_v40  ;;  %v1056_v18 = vmul.f32 %v2697_v14, %v2697_v14 }
 0x912   :  { %v1020_v51 = vrot.slane %v998_v10, 1  ;;  %v1011_v63 = vmul.f32 %v2669_v61, %v1006_v21 }
 0x914   :  { %v1021_v6 = vsel %vm361_vm2, %v1019_v42, %v1020_v51  ;;  %v1015_v56 = vadd.f32 %v1011_v63, %v966_v8  ;;  %v1024_v29 = vsel %vm361_vm2, %v1020_v51, %v1017_v5 }
 0x915   :  { %v1027_v12 = vmul.f32 %v2683_v50, %v1021_v6  ;;  %v1028_v53 = vmul.f32 %v2703_v39, %v1024_v29 }
 0x916   :  { %v940_v1 = vpop.f32.mrf.mxu2  ;;  %v969_v33 = vpop.f32.mrf.mxu3 }
 0x917   :  { %v1004_v7 = vrot.slane %v940_v1, 7  ;;  %v2699_v43 = vadd.f32 %v1027_v12, %v1015_v56 }
 0x919   :  { %v1008_v46 = vsel %vm344_vm1, %v1004_v7, %v1001_v47  ;;  %v1005_v52 = vsel %vm344_vm1, %v1003_v40, %v1004_v7  ;;  %v1057_v59 = vmul.f32 %v2699_v43, %v2699_v43 }
 0x91a   :  { %v1009_v45 = vmul.f32 %v2686_v17, %v1008_v46  ;;  %v1012_v26 = vmul.f32 %v2689_v24, %v1005_v52 }
 0x91c   :  { %v1013_v58 = vadd.f32 %v1009_v45, %v960_v32  ;;  %v1016_v41 = vadd.f32 %v1012_v26, %v969_v33 }
 0x91e   :  { %v2701_v49 = vadd.f32 %v1025_v30, %v1013_v58  ;;  %v2708_v19 = vadd.f32 %v1028_v53, %v1016_v41 }
 0x920   :  { %v1033_v38 = vadd.f32 %v2697_v14, %v2701_v49  ;;  %v1055_v23 = vmul.f32 %v2701_v49, %v2701_v49  ;;  %v1058_v31 = vmul.f32 %v2708_v19, %v2708_v19 }
 0x922   :  { %v1034_v36 = vadd.f32 %v1033_v38, %v2699_v43  ;;  %v1059_v32 = vadd.f32 %v1056_v18, %v1055_v23 }
 0x924   :  { %v1035_v28 = vadd.f32 %v1034_v36, %v2708_v19  ;;  %v1060_v27 = vadd.f32 %v1059_v32, %v1057_v59  ;;  %v2731_v32 = vld [vmem:[%s2885_s7] sm:$0x1]  ;;  %s1801_s7 = smov [#allocation13]  }
 0x926   :  { %v1036_v60 = vrot.slane %v1035_v28, 4  ;;  %v1061_v35 = vadd.f32 %v1060_v27, %v1058_v31 }
 0x928   :  { %v1037_v25 = vadd.f32 %v1036_v60, %v1035_v28  ;;  %v1062_v47 = vrot.slane %v1061_v35, 4  ;;  %v2737_v60 = vld [vmem:[%s2886_s8] sm:$0x1]  ;;  %s1537_s8 = sshll.u32 %s1801_s7, 4  ;;  %s1538_s8 = int_to_ptr.vmem [resolvable:$true] %s1537_s8 }
 0x92a   :  { %v1038_v40 = vrot.slane %v1037_v25, 2  ;;  %v1063_v48 = vadd.f32 %v1062_v47, %v1061_v35 }
 0x92c   :  { %v1039_v42 = vadd.f32 %v1038_v40, %v1037_v25  ;;  %v1064_v8 = vrot.slane %v1063_v48, 2 }
 0x92e   :  { %v1040_v10 = vrot.slane %v1039_v42, 1  ;;  %v1065_v44 = vadd.f32 %v1064_v8, %v1063_v48 }
 0x930   :  { %v1041_v21 = vadd.f32 %v1040_v10, %v1039_v42  ;;  %v1066_v51 = vrot.slane %v1065_v44, 1 }
 0x932   :  { %1042 = vrot.lane.b32.xlu0 %v1041_v21, %s1790_s23  ;;  %v1067_v55 = vadd.f32 %v1066_v51, %v1065_v44 }
 0x934   :  { %1068 = vrot.lane.b32.xlu1 %v1067_v55, %s1790_s23 }
 0x9a4   :  { %v1043_v57 = vpop.permute.xlu0 %1042 }
 0x9a5   :  { %v1044_v63 = vadd.f32 %v1043_v57, %v1041_v21 }
 0x9a6   :  { %v1069_v1 = vpop.permute.xlu1 %1068 }
 0x9a7   :  { %v1070_v5 = vadd.f32 %v1069_v1, %v1067_v55  ;;  %1045 = vrot.lane.b32.xlu2 %v1044_v63, %s1798_s2 }
 0x9a9   :  { %1071 = vrot.lane.b32.xlu0 %v1070_v5, %s1798_s2 }
 0xa01   :  { %v1046_v6 = vpop.permute.xlu2 %1045 }
 0xa02   :  { %v1047_v7 = vadd.f32 %v1046_v6, %v1044_v63 }
 0xa04   :  { %1048 = vrot.lane.b32.xlu1 %v1047_v7, %s1799_s30 }
 0xa1b   :  { %v1072_v9 = vpop.permute.xlu0 %1071 }
 0xa1c   :  { %v1073_v15 = vadd.f32 %v1072_v9, %v1070_v5 }
 0xa1e   :  { %1074 = vrot.lane.b32.xlu2 %v1073_v15, %s1799_s30 }
 0xa76   :  { %v1049_v16 = vpop.permute.xlu1 %1048 }
 0xa77   :  { %v1050_v46 = vadd.f32 %v1049_v16, %v1047_v7 }
 0xa78   :  { %v1075_v52 = vpop.permute.xlu2 %1074 }
 0xa79   :  { %v1076_v56 = vadd.f32 %v1075_v52, %v1073_v15  ;;  %1051 = vrot.lane.b32.xlu0 %v1050_v46, %s1800_s1 }
 0xa7b   :  { %1077 = vrot.lane.b32.xlu1 %v1076_v56, %s1800_s1 }
 0xaeb   :  { %v1052_v12 = vpop.permute.xlu0 %1051 }
 0xaec   :  { %v1053_v45 = vadd.f32 %v1052_v12, %v1050_v46 }
 0xaed   :  { %v1078_v26 = vpop.permute.xlu1 %1077 }
 0xaee   :  { %v1054_v29 = vmul.f32 0.001953125, %v1053_v45  ;;  %v1079_v33 = vadd.f32 %v1078_v26, %v1076_v56 }
 0xaf0   :  { %v1081_v30 = vmul.f32 %v1054_v29, %v1054_v29  ;;  %v1080_v58 = vmul.f32 0.001953125, %v1079_v33 }
 0xaf2   :  { %v1082_v41 = vsub.f32 %v1080_v58, %v1081_v30 }
 0xaf4   :  { %v1083_v53 = vadd.f32 1e-05, %v1082_v41 }
 0xaf6   :  { %1596 = vrsqrt.f32 %v1083_v53  ;;  %vm1090_vm13 = vweird.f32 %v1083_v53 }
 0xafc   :  { %v1597_v18 = vpop.eup %1596 }
 0xafd   :  { %v1085_v38 = vmul.f32 %v1597_v18, %v1083_v53  ;;  %vm1091_vm12 = vweird.f32 %v1597_v18 }
 0xafe   :  { %vm1092_vm14 = vmor %vm1090_vm13, %vm1091_vm12 }
 0xaff   :  { %v1086_v23 = vmul.f32 %v1597_v18, %v1085_v38 }
 0xb01   :  { %v1087_v36 = vmul.f32 0.5, %v1086_v23 }
 0xb03   :  { %v1088_v59 = vsub.f32 1.5, %v1087_v36 }
 0xb05   :  { %v1089_v28 = vmul.f32 %v1597_v18, %v1088_v59 }
 0xb07   :  { %v1093_v31 = vsel %vm1092_vm14, %v1597_v18, %v1089_v28 }
 0xb08   :  { %v1094_v27 = vmul.f32 %v1093_v31, %v2731_v32 }
 0xb0a   :  { %v1095_v35 = vmul.f32 %v1094_v27, %v1054_v29  ;;  %v1098_v25 = vperm.slane %v1094_v27, 0 }
 0xb0c   :  { %v1096_v47 = vsub.f32 %v2737_v60, %v1095_v35  ;;  %v1100_v48 = vmul.f32 %v1098_v25, %v2701_v49  ;;  %v1101_v10 = vmul.f32 %v1098_v25, %v2697_v14  ;;  %v1102_v55 = vmul.f32 %v1098_v25, %v2699_v43 }
 0xb0d   :  { %v1103_v1 = vmul.f32 %v1098_v25, %v2708_v19 }
 0xb0e   :  { %v1105_v40 = vperm.slane %v1096_v47, 0 }
 0xb10   :  { %v1107_v42 = vadd.f32 %v1105_v40, %v1100_v48  ;;  %v1108_v21 = vadd.f32 %v1105_v40, %v1101_v10  ;;  %v1109_v63 = vadd.f32 %v1105_v40, %v1102_v55  ;;  %v1110_v5 = vadd.f32 %v1105_v40, %v1103_v1 }
 0xb12   :  { %v1111_v8 = vmax.f32 %v1107_v42, 0.0  ;;  %v1112_v51 = vmax.f32 %v1108_v21, 0.0  ;;  %v1113_v49 = vmax.f32 %v1109_v63, 0.0  ;;  %v1114_v6 = vmax.f32 %v1110_v5, 0.0 }
 0xb14   :  { %v1115_v44 = vadd.f32 %v1111_v8, %v2595_v3  ;;  %v1116_v57 = vadd.f32 %v1112_v51, %v2614_v34  ;;  %v1117_v14 = vadd.f32 %v1113_v49, %v2628_v22  ;;  %v1118_v7 = vadd.f32 %v1114_v6, %v2641_v20 }
 0xb16   :  { %1135 = vmatmul.f32.vlgmr.msrb.gmra.mxu1 %v1115_v44  ;;  %1164 = vmatmul.f32.vlgmr.msrb.gmra.mxu2 %v1115_v44 }
 0xb17   :  { %1193 = vmatmul.f32.vlgmr.msrb.gmra.mxu3 %v1115_v44 }
 0xb1e   :  { %1138 = vmatmul.f32.gmra.mxu1 %v1116_v57  ;;  %1167 = vmatmul.f32.gmra.mxu2 %v1116_v57 }
 0xb1f   :  { %1196 = vmatmul.f32.gmra.mxu3 %v1116_v57 }
 0xb26   :  { %1141 = vmatmul.f32.gmra.mxu1 %v1117_v14  ;;  %1170 = vmatmul.f32.gmra.mxu2 %v1117_v14 }
 0xb27   :  { %1199 = vmatmul.f32.gmra.mxu3 %v1117_v14 }
 0xb2e   :  { %1144 = vmatmul.f32.gmra.mxu1 %v1118_v7  ;;  %1173 = vmatmul.f32.gmra.mxu2 %v1118_v7 }
 0xb2f   :  { %1202 = vmatmul.f32.gmra.mxu3 %v1118_v7 }
 0xb93   :  { %v1136_v43 = vpop.f32.mrf.mxu1 }
 0xb94   :  { %v1206_v12 = vrot.slane %v1136_v43, 7 }
 0xb99   :  { %v1165_v9 = vpop.f32.mrf.mxu2 }
 0xb9a   :  { %v1194_v15 = vpop.f32.mrf.mxu3 }
 0xb9b   :  { %v1139_v16 = vpop.f32.mrf.mxu1  ;;  %v1222_v53 = vrot.slane %v1194_v15, 1 }
 0xb9c   :  { %v1207_v19 = vrot.slane %v1139_v16, 7 }
 0xb9e   :  { %v1212_v30 = vsel %vm344_vm1, %v1206_v12, %v1207_v19 }
 0xb9f   :  { %v1215_v23 = vmul.f32 %v2664_v54, %v1212_v30 }
 0xba1   :  { %v1168_v46 = vpop.f32.mrf.mxu2 }
 0xba2   :  { %v1197_v52 = vpop.f32.mrf.mxu3  ;;  %v1219_v48 = vadd.f32 %v1215_v23, %v1168_v46 }
 0xba3   :  { %v1142_v56 = vpop.f32.mrf.mxu1  ;;  %v1223_v26 = vrot.slane %v1197_v52, 1 }
 0xba4   :  { %v1208_v29 = vrot.slane %v1142_v56, 7 }
 0xba5   :  { %v1228_v36 = vsel %vm361_vm2, %v1222_v53, %v1223_v26 }
 0xba6   :  { %v1211_v59 = vsel %vm344_vm1, %v1207_v19, %v1208_v29  ;;  %v1230_v25 = vmul.f32 %v2694_v37, %v1228_v36 }
 0xba7   :  { %v1216_v47 = vmul.f32 %v2669_v61, %v1211_v59 }
 0xba9   :  { %v1171_v45 = vpop.f32.mrf.mxu2 }
 0xbaa   :  { %v1200_v33 = vpop.f32.mrf.mxu3  ;;  %v1220_v55 = vadd.f32 %v1216_v47, %v1171_v45 }
 0xbab   :  { %v1224_v58 = vrot.slane %v1200_v33, 1  ;;  %v1145_v41 = vpop.f32.mrf.mxu1 }
 0xbac   :  { %v1209_v18 = vrot.slane %v1145_v41, 7 }
 0xbad   :  { %v1227_v38 = vsel %vm361_vm2, %v1223_v26, %v1224_v58 }
 0xbae   :  { %v1213_v28 = vsel %vm344_vm1, %v1209_v18, %v1206_v12  ;;  %v1210_v27 = vsel %vm344_vm1, %v1208_v29, %v1209_v18  ;;  %v1231_v35 = vmul.f32 %v2674_v11, %v1227_v38 }
 0xbaf   :  { %v1214_v31 = vmul.f32 %v2686_v17, %v1213_v28  ;;  %v1217_v42 = vmul.f32 %v2689_v24, %v1210_v27 }
 0xbb0   :  { %v2768_v51 = vadd.f32 %v1231_v35, %v1219_v48 }
 0xbb1   :  { %v1218_v40 = vadd.f32 %v1214_v31, %v1165_v9  ;;  %v1174_v44 = vpop.f32.mrf.mxu2 }
 0xbb2   :  { %v1203_v8 = vpop.f32.mrf.mxu3  ;;  %v1221_v49 = vadd.f32 %v1217_v42, %v1174_v44  ;;  %v1261_v6 = vmul.f32 %v2768_v51, %v2768_v51 }
 0xbb3   :  { %v2766_v10 = vadd.f32 %v1230_v25, %v1218_v40  ;;  %v1225_v21 = vrot.slane %v1203_v8, 1 }
 0xbb5   :  { %v1226_v57 = vsel %vm361_vm2, %v1224_v58, %v1225_v21  ;;  %v1229_v63 = vsel %vm361_vm2, %v1225_v21, %v1222_v53  ;;  %v1260_v5 = vmul.f32 %v2766_v10, %v2766_v10  ;;  %v1238_v9 = vadd.f32 %v2768_v51, %v2766_v10 }
 0xbb6   :  { %v1232_v1 = vmul.f32 %v2683_v50, %v1226_v57  ;;  %v1233_v14 = vmul.f32 %v2703_v39, %v1229_v63 }
 0xbb7   :  { %v1264_v46 = vadd.f32 %v1261_v6, %v1260_v5 }
 0xbb8   :  { %v2780_v7 = vadd.f32 %v1232_v1, %v1220_v55  ;;  %v2782_v43 = vadd.f32 %v1233_v14, %v1221_v49 }
 0xbba   :  { %v1239_v15 = vadd.f32 %v1238_v9, %v2780_v7  ;;  %v1262_v16 = vmul.f32 %v2780_v7, %v2780_v7  ;;  %v1263_v56 = vmul.f32 %v2782_v43, %v2782_v43 }
 0xbbc   :  { %v1240_v52 = vadd.f32 %v1239_v15, %v2782_v43  ;;  %v1265_v19 = vadd.f32 %v1264_v46, %v1262_v16 }
 0xbbe   :  { %v1241_v12 = vrot.slane %v1240_v52, 4  ;;  %v1266_v45 = vadd.f32 %v1265_v19, %v1263_v56 }
 0xbc0   :  { %v1242_v26 = vadd.f32 %v1241_v12, %v1240_v52  ;;  %v1267_v29 = vrot.slane %v1266_v45, 4 }
 0xbc2   :  { %v1243_v33 = vrot.slane %v1242_v26, 2  ;;  %v1268_v30 = vadd.f32 %v1267_v29, %v1266_v45 }
 0xbc4   :  { %v1244_v58 = vadd.f32 %v1243_v33, %v1242_v26  ;;  %v1269_v41 = vrot.slane %v1268_v30, 2 }
 0xbc6   :  { %v1245_v53 = vrot.slane %v1244_v58, 1  ;;  %v1270_v18 = vadd.f32 %v1269_v41, %v1268_v30 }
 0xbc8   :  { %v1246_v38 = vadd.f32 %v1245_v53, %v1244_v58  ;;  %v1271_v23 = vrot.slane %v1270_v18, 1 }
 0xbca   :  { %1247 = vrot.lane.b32.xlu2 %v1246_v38, %s1790_s23  ;;  %v1272_v36 = vadd.f32 %v1271_v23, %v1270_v18 }
 0xbcc   :  { %1273 = vrot.lane.b32.xlu0 %v1272_v36, %s1790_s23 }
 0xc24   :  { %v1248_v59 = vpop.permute.xlu2 %1247 }
 0xc25   :  { %v1249_v28 = vadd.f32 %v1248_v59, %v1246_v38 }
 0xc27   :  { %1250 = vrot.lane.b32.xlu1 %v1249_v28, %s1798_s2 }
 0xc3e   :  { %v1274_v31 = vpop.permute.xlu0 %1273 }
 0xc3f   :  { %v1275_v27 = vadd.f32 %v1274_v31, %v1272_v36 }
 0xc41   :  { %1276 = vrot.lane.b32.xlu2 %v1275_v27, %s1798_s2 }
 0xc99   :  { %v1251_v35 = vpop.permute.xlu1 %1250 }
 0xc9a   :  { %v1252_v25 = vadd.f32 %v1251_v35, %v1249_v28 }
 0xc9b   :  { %v1277_v47 = vpop.permute.xlu2 %1276 }
 0xc9c   :  { %v1278_v40 = vadd.f32 %v1277_v47, %v1275_v27  ;;  %1253 = vrot.lane.b32.xlu0 %v1252_v25, %s1799_s30 }
 0xc9e   :  { %1279 = vrot.lane.b32.xlu1 %v1278_v40, %s1799_s30 }
 0xd0e   :  { %v1254_v48 = vpop.permute.xlu0 %1253 }
 0xd0f   :  { %v1255_v42 = vadd.f32 %v1254_v48, %v1252_v25 }
 0xd10   :  { %v1280_v8 = vpop.permute.xlu1 %1279 }
 0xd11   :  { %v1281_v44 = vadd.f32 %v1280_v8, %v1278_v40  ;;  %1256 = vrot.lane.b32.xlu2 %v1255_v42, %s1800_s1 }
 0xd13   :  { %1282 = vrot.lane.b32.xlu0 %v1281_v44, %s1800_s1 }
 0xd6b   :  { %v1257_v21 = vpop.permute.xlu2 %1256 }
 0xd6c   :  { %v1258_v55 = vadd.f32 %v1257_v21, %v1255_v42 }
 0xd6e   :  { %v1259_v57 = vmul.f32 0.001953125, %v1258_v55 }
 0xd70   :  { %v1286_v1 = vmul.f32 %v1259_v57, %v1259_v57 }
 0xd85   :  { %v1283_v63 = vpop.permute.xlu0 %1282 }
 0xd86   :  { %v1284_v49 = vadd.f32 %v1283_v63, %v1281_v44 }
 0xd88   :  { %v1285_v14 = vmul.f32 0.001953125, %v1284_v49 }
 0xd8a   :  { %v1287_v5 = vsub.f32 %v1285_v14, %v1286_v1 }
 0xd8c   :  { %v1288_v6 = vadd.f32 1e-05, %v1287_v5 }
 0xd8e   :  { %1598 = vrsqrt.f32 %v1288_v6  ;;  %vm1295_vm0 = vweird.f32 %v1288_v6 }
 0xd94   :  { %v1599_v9 = vpop.eup %1598 }
 0xd95   :  { %v1290_v15 = vmul.f32 %v1599_v9, %v1288_v6  ;;  %vm1296_vm15 = vweird.f32 %v1599_v9 }
 0xd96   :  { %vm1297_vm3 = vmor %vm1295_vm0, %vm1296_vm15 }
 0xd97   :  { %v1291_v16 = vmul.f32 %v1599_v9, %v1290_v15 }
 0xd99   :  { %v1292_v46 = vmul.f32 0.5, %v1291_v16 }
 0xd9b   :  { %v1293_v52 = vsub.f32 1.5, %v1292_v46 }
 0xd9d   :  { %v1294_v56 = vmul.f32 %v1599_v9, %v1293_v52 }
 0xd9f   :  { %v1298_v19 = vsel %vm1297_vm3, %v1599_v9, %v1294_v56 }
 0xda0   :  { %v1299_v12 = vmul.f32 %v1298_v19, %v2731_v32 }
 0xda2   :  { %v1300_v45 = vmul.f32 %v1299_v12, %v1259_v57  ;;  %v1303_v26 = vperm.slane %v1299_v12, 0 }
 0xda4   :  { %v1301_v29 = vsub.f32 %v2737_v60, %v1300_v45  ;;  %v1305_v30 = vmul.f32 %v1303_v26, %v2766_v10  ;;  %v1306_v58 = vmul.f32 %v1303_v26, %v2768_v51  ;;  %v1307_v23 = vmul.f32 %v1303_v26, %v2780_v7 }
 0xda5   :  { %v1308_v10 = vmul.f32 %v1303_v26, %v2782_v43 }
 0xda6   :  { %v1310_v33 = vperm.slane %v1301_v29, 0 }
 0xda8   :  { %v1312_v41 = vadd.f32 %v1310_v33, %v1305_v30  ;;  %v1313_v53 = vadd.f32 %v1310_v33, %v1306_v58  ;;  %v1314_v28 = vadd.f32 %v1310_v33, %v1307_v23  ;;  %v1315_v27 = vadd.f32 %v1310_v33, %v1308_v10 }
 0xdaa   :  { %v1316_v18 = vmax.f32 %v1312_v41, 0.0  ;;  %v1317_v38 = vmax.f32 %v1313_v53, 0.0  ;;  %v1318_v31 = vmax.f32 %v1314_v28, 0.0  ;;  %v1319_v35 = vmax.f32 %v1315_v27, 0.0 }
 0xdac   :  { %v1320_v36 = vadd.f32 %v1316_v18, %v2595_v3  ;;  %v1321_v59 = vadd.f32 %v1317_v38, %v2614_v34  ;;  %v1322_v51 = vadd.f32 %v1318_v31, %v2628_v22  ;;  %v1323_v7 = vadd.f32 %v1319_v35, %v2641_v20 }
 0xdae   :  { %1340 = vmatmul.f32.vlgmr.msra.gmra.mxu0 %v1320_v36  ;;  %1369 = vmatmul.f32.vlgmr.msra.gmra.mxu1 %v1320_v36 }
 0xdaf   :  { %1372 = vmatmul.f32.vlgmr.msra.gmra.mxu3 %v1321_v59  ;;  %1398 = vmatmul.f32.vlgmr.msra.gmra.mxu2 %v1320_v36 }
 0xdb6   :  { %1343 = vmatmul.f32.gmra.mxu0 %v1321_v59 }
 0xdb7   :  { %1375 = vmatmul.f32.gmra.mxu3 %v1322_v51  ;;  %1401 = vmatmul.f32.gmra.mxu2 %v1321_v59 }
 0xdbe   :  { %1346 = vmatmul.f32.gmra.mxu0 %v1322_v51 }
 0xdbf   :  { %1378 = vmatmul.f32.gmra.mxu3 %v1323_v7  ;;  %1404 = vmatmul.f32.gmra.mxu2 %v1322_v51 }
 0xdc6   :  { %1349 = vmatmul.f32.gmra.mxu0 %v1323_v7 }
 0xdc7   :  { %1407 = vmatmul.f32.gmra.mxu2 %v1323_v7 }
 0xe2b   :  { %v1341_v3 = vpop.f32.mrf.mxu0  ;;  %v1370_v46 = vpop.f32.mrf.mxu1 }
 0xe2c   :  { %v1411_v22 = vrot.slane %v1341_v3, 7 }
 0xe32   :  { %v1399_v34 = vpop.f32.mrf.mxu2  ;;  %v1373_v47 = vpop.f32.mrf.mxu3 }
 0xe33   :  { %v1344_v25 = vpop.f32.mrf.mxu0  ;;  %v1427_v63 = vrot.slane %v1399_v34, 1 }
 0xe34   :  { %v1412_v48 = vrot.slane %v1344_v25, 7 }
 0xe36   :  { %v1417_v21 = vsel %vm344_vm1, %v1411_v22, %v1412_v48 }
 0xe37   :  { %v1420_v14 = vmul.f32 %v2664_v54, %v1417_v21 }
 0xe39   :  { %v1424_v12 = vadd.f32 %v1420_v14, %v1373_v47 }
 0xe3a   :  { %v1402_v40 = vpop.f32.mrf.mxu2  ;;  %v1376_v20 = vpop.f32.mrf.mxu3 }
 0xe3b   :  { %v1347_v43 = vpop.f32.mrf.mxu0  ;;  %v1428_v42 = vrot.slane %v1402_v40, 1 }
 0xe3c   :  { %v1413_v8 = vrot.slane %v1347_v43, 7 }
 0xe3d   :  { %v1433_v5 = vsel %vm361_vm2, %v1427_v63, %v1428_v42 }
 0xe3e   :  { %v1416_v6 = vsel %vm344_vm1, %v1412_v48, %v1413_v8  ;;  %v1435_v56 = vmul.f32 %v2694_v37, %v1433_v5 }
 0xe3f   :  { %v1421_v54 = vmul.f32 %v2669_v61, %v1416_v6 }
 0xe41   :  { %v1425_v58 = vadd.f32 %v1421_v54, %v1376_v20 }
 0xe42   :  { %v1405_v44 = vpop.f32.mrf.mxu2  ;;  %v1379_v41 = vpop.f32.mrf.mxu3 }
 0xe43   :  { %v1429_v55 = vrot.slane %v1405_v44, 1  ;;  %v1350_v57 = vpop.f32.mrf.mxu0 }
 0xe44   :  { %v1414_v49 = vrot.slane %v1350_v57, 7 }
 0xe45   :  { %v1432_v1 = vsel %vm361_vm2, %v1428_v42, %v1429_v55 }
 0xe46   :  { %v1418_v9 = vsel %vm344_vm1, %v1414_v49, %v1411_v22  ;;  %v1415_v15 = vsel %vm344_vm1, %v1413_v8, %v1414_v49  ;;  %v1436_v52 = vmul.f32 %v2674_v11, %v1432_v1 }
 0xe47   :  { %v1419_v16 = vmul.f32 %v2686_v17, %v1418_v9  ;;  %v1422_v45 = vmul.f32 %v2689_v24, %v1415_v15 }
 0xe48   :  { %v2830_v30 = vadd.f32 %v1436_v52, %v1424_v12 }
 0xe49   :  { %v1423_v19 = vadd.f32 %v1419_v16, %v1370_v46  ;;  %v1426_v37 = vadd.f32 %v1422_v45, %v1379_v41 }
 0xe4a   :  { %v1408_v26 = vpop.f32.mrf.mxu2  ;;  %v1466_v18 = vmul.f32 %v2830_v30, %v2830_v30 }
 0xe4b   :  { %v2828_v29 = vadd.f32 %v1435_v56, %v1423_v19  ;;  %v1430_v33 = vrot.slane %v1408_v26, 1 }
 0xe4d   :  { %v1431_v17 = vsel %vm361_vm2, %v1429_v55, %v1430_v33  ;;  %v1434_v11 = vsel %vm361_vm2, %v1430_v33, %v1427_v63  ;;  %v1465_v24 = vmul.f32 %v2828_v29, %v2828_v29  ;;  %v1443_v36 = vadd.f32 %v2830_v30, %v2828_v29 }
 0xe4e   :  { %v1437_v61 = vmul.f32 %v2683_v50, %v1431_v17  ;;  %v1438_v53 = vmul.f32 %v2703_v39, %v1434_v11 }
 0xe4f   :  { %v1469_v59 = vadd.f32 %v1466_v18, %v1465_v24 }
 0xe50   :  { %v2842_v38 = vadd.f32 %v1437_v61, %v1425_v58  ;;  %v2844_v23 = vadd.f32 %v1438_v53, %v1426_v37 }
 0xe52   :  { %v1444_v13 = vadd.f32 %v1443_v36, %v2842_v38  ;;  %v1467_v50 = vmul.f32 %v2842_v38, %v2842_v38  ;;  %v1468_v28 = vmul.f32 %v2844_v23, %v2844_v23 }
 0xe54   :  { %v1445_v39 = vadd.f32 %v1444_v13, %v2844_v23  ;;  %v1470_v31 = vadd.f32 %v1469_v59, %v1467_v50 }
 0xe56   :  { %v1446_v10 = vrot.slane %v1445_v39, 4  ;;  %v1471_v51 = vadd.f32 %v1470_v31, %v1468_v28 }
 0xe58   :  { %v1447_v27 = vadd.f32 %v1446_v10, %v1445_v39  ;;  %v1472_v35 = vrot.slane %v1471_v51, 4 }
 0xe5a   :  { %v1448_v7 = vrot.slane %v1447_v27, 2  ;;  %v1473_v3 = vadd.f32 %v1472_v35, %v1471_v51 }
 0xe5c   :  { %v1449_v34 = vadd.f32 %v1448_v7, %v1447_v27  ;;  %v1474_v25 = vrot.slane %v1473_v3, 2 }
 0xe5e   :  { %v1450_v47 = vrot.slane %v1449_v34, 1  ;;  %v1475_v40 = vadd.f32 %v1474_v25, %v1473_v3 }
 0xe60   :  { %v1451_v43 = vadd.f32 %v1450_v47, %v1449_v34  ;;  %v1476_v48 = vrot.slane %v1475_v40, 1 }
 0xe62   :  { %1452 = vrot.lane.b32.xlu1 %v1451_v43, %s1790_s23  ;;  %v1477_v22 = vadd.f32 %v1476_v48, %v1475_v40 }
 0xe64   :  { %1478 = vrot.lane.b32.xlu2 %v1477_v22, %s1790_s23 }
 0xebe   :  { %v1479_v42 = vpop.permute.xlu2 %1478 }
 0xebf   :  { %v1480_v8 = vadd.f32 %v1479_v42, %v1477_v22 }
 0xec1   :  { %1481 = vrot.lane.b32.xlu1 %v1480_v8, %s1798_s2 }
 0xed4   :  { %v1453_v44 = vpop.permute.xlu1 %1452 }
 0xed5   :  { %v1454_v21 = vadd.f32 %v1453_v44, %v1451_v43 }
 0xed7   :  { %1455 = vrot.lane.b32.xlu0 %v1454_v21, %s1798_s2 }
 0xf33   :  { %v1482_v20 = vpop.permute.xlu1 %1481 }
 0xf34   :  { %v1483_v55 = vadd.f32 %v1482_v20, %v1480_v8 }
 0xf36   :  { %1484 = vrot.lane.b32.xlu0 %v1483_v55, %s1799_s30 }
 0xf49   :  { %v1456_v57 = vpop.permute.xlu0 %1455 }
 0xf4a   :  { %v1457_v63 = vadd.f32 %v1456_v57, %v1454_v21 }
 0xf4c   :  { %1458 = vrot.lane.b32.xlu2 %v1457_v63, %s1799_s30 }
 0xfa6   :  { %v1459_v49 = vpop.permute.xlu2 %1458 }
 0xfa7   :  { %v1460_v1 = vadd.f32 %v1459_v49, %v1457_v63 }
 0xfa8   :  { %v1485_v14 = vpop.permute.xlu0 %1484 }
 0xfa9   :  { %v1486_v5 = vadd.f32 %v1485_v14, %v1483_v55  ;;  %1461 = vrot.lane.b32.xlu1 %v1460_v1, %s1800_s1 }
 0xfab   :  { %1487 = vrot.lane.b32.xlu2 %v1486_v5, %s1800_s1 }
0x1005   :  { %v1488_v6 = vpop.permute.xlu2 %1487 }
0x1006   :  { %v1489_v15 = vadd.f32 %v1488_v6, %v1486_v5 }
0x1008   :  { %v1490_v52 = vmul.f32 0.001953125, %v1489_v15 }
0x101b   :  { %v1462_v9 = vpop.permute.xlu1 %1461 }
0x101c   :  { %v1463_v16 = vadd.f32 %v1462_v9, %v1460_v1 }
0x101e   :  { %v1464_v46 = vmul.f32 0.001953125, %v1463_v16 }
0x1020   :  { %v1491_v56 = vmul.f32 %v1464_v46, %v1464_v46 }
0x1022   :  { %v1492_v54 = vsub.f32 %v1490_v52, %v1491_v56 }
0x1024   :  { %v1493_v19 = vadd.f32 1e-05, %v1492_v54 }
0x1026   :  { %1600 = vrsqrt.f32 %v1493_v19  ;;  %vm1500_vm2 = vweird.f32 %v1493_v19 }
0x102c   :  { %v1601_v12 = vpop.eup %1600 }
0x102d   :  { %v1495_v45 = vmul.f32 %v1601_v12, %v1493_v19  ;;  %vm1501_vm1 = vweird.f32 %v1601_v12 }
0x102e   :  { %vm1502_vm4 = vmor %vm1500_vm2, %vm1501_vm1 }
0x102f   :  { %v1496_v26 = vmul.f32 %v1601_v12, %v1495_v45 }
0x1031   :  { %v1497_v33 = vmul.f32 0.5, %v1496_v26 }
0x1033   :  { %v1498_v58 = vsub.f32 1.5, %v1497_v33 }
0x1035   :  { %v1499_v41 = vmul.f32 %v1601_v12, %v1498_v58 }
0x1037   :  { %v1503_v17 = vsel %vm1502_vm4, %v1601_v12, %v1499_v41 }
0x1038   :  { %v1504_v11 = vmul.f32 %v1503_v17, %v2731_v32 }
0x103a   :  { %v1505_v37 = vmul.f32 %v1504_v11, %v1464_v46  ;;  %v1508_v61 = vperm.slane %v1504_v11, 0 }
0x103c   :  { %v1506_v53 = vsub.f32 %v2737_v60, %v1505_v37  ;;  %v1510_v24 = vmul.f32 %v1508_v61, %v2828_v29  ;;  %v1511_v18 = vmul.f32 %v1508_v61, %v2830_v30  ;;  %v1512_v36 = vmul.f32 %v1508_v61, %v2842_v38 }
0x103d   :  { %v1513_v13 = vmul.f32 %v1508_v61, %v2844_v23 }
0x103e   :  { %v1515_v50 = vperm.slane %v1506_v53, 0 }
0x1040   :  { %v1517_v59 = vadd.f32 %v1515_v50, %v1510_v24  ;;  %v1518_v39 = vadd.f32 %v1515_v50, %v1511_v18  ;;  %v1519_v28 = vadd.f32 %v1515_v50, %v1512_v36  ;;  %v1520_v31 = vadd.f32 %v1515_v50, %v1513_v13 }
0x1042   :  { %v1521_v10 = vmax.f32 %v1517_v59, 0.0  ;;  %v1522_v51 = vmax.f32 %v1518_v39, 0.0  ;;  %v1523_v32 = vmax.f32 %v1519_v28, 0.0  ;;  %v1524_v27 = vmax.f32 %v1520_v31, 0.0 }
0x1044   :  { %v1525_v35 = vadd.f32 %v1521_v10, %v2117_v62  ;;  %v1526_v60 = vadd.f32 %v1522_v51, %v2131_v0  ;;  %v1527_v29 = vadd.f32 %v1523_v32, %v2140_v2  ;;  %v1528_v30 = vadd.f32 %v1524_v27, %v2149_v4 }
0x1046   :  { %1529 = vst [vmem:[#allocation13] sm:$0xff] %v1525_v35 }
0x1047   :  { %1530 = vst [vmem:[#allocation13 + $0x8] sm:$0xff] %v1526_v60 }
0x1048   :  { %1531 = vst [vmem:[#allocation13 + $0x10] sm:$0xff] %v1527_v29 }
0x1049   :  { %1532 = vst [vmem:[#allocation13 + $0x18] sm:$0xff] %v1528_v30 }
0x104a   :  { %1545 = dma.vmem_to_hbm [thread:$0]  %s1538_s8, 512, %s1540_s19, [#allocation4], %s1789_s22, %s1789_s22, %s1790_s23  }
0x104b   :  { %1786 = dma.done.wait [#allocation4], 512  }
0x104c   :  { %1787 = vsyncadd [#allocation4], 4294966784 }
0x104d   :  { %1550 = vsyncpa [#allocation3], 1 }
0x104e   :  { %1551 = vsyncpa [#allocation6], 1 }
0x104f   :  { %1552 = vsyncpa [#allocation9], 1 }
0x1050   :  { %1553 = vsyncpa [#allocation12], 1 }
0x1051   :  { %1554 = vsyncpa [#allocation4], 1 }

</bundles_post_ra>
